<compile_context>
chip_gen: v7x
topology: tpu7x:2x2x1
jax: 0.10.0
libtpu: 0.0.40
codegen_flags: <defaults>
</compile_context>

<pallas_src>
import functools
from dataclasses import dataclass

import jax
import jax.numpy as jnp
from jax import lax
from jax.experimental import pallas as pl
from jax.experimental.pallas import tpu as pltpu

F32 = jnp.float32
BF16 = jnp.bfloat16


@dataclass(frozen=True)
class LossConfig:
    policy_weight: float = 1.0
    value_weight: float = 1.0
    entropy_weight: float = 0.01
    pag_weight: float = 2.0
    graph_weight: float = 1.0
    king_safety_weight: float = 1.5
    center_control_weight: float = 1.0
    material_balance_weight: float = 5.0
    piece_coordination_weight: float = 1.0
    attack_pattern_weight: float = 1.5


# component slots in the fused kernel's SMEM output vector
_POLICY, _VALUE, _KS, _CC, _MAT, _COORD, _ATTACK, _GRAPH, _TOTAL = range(9)
_NUM_OUT = 9


# ----------------------------------------------------------------------------
# In-kernel loss helpers (f32 values -> 0-d f32 scalars)
# ----------------------------------------------------------------------------

def _soft_ce(x, t):
    # F.cross_entropy with probability targets, without materializing
    # log_softmax:  mean_b( lse_b * sum_c(t) - sum_c(t * x) )   (exact)
    m = jnp.max(x, axis=-1, keepdims=True)
    lse = jnp.log(jnp.sum(jnp.exp(x - m), axis=-1, keepdims=True)) + m
    t_sum = jnp.sum(t, axis=-1, keepdims=True)
    tx_sum = jnp.sum(t * x, axis=-1, keepdims=True)
    return jnp.sum(lse * t_sum - tx_sum) / x.shape[0]


def _huber_mean(p, t):
    # F.huber_loss(delta=1) == F.smooth_l1_loss(beta=1)
    d = p - t
    ad = jnp.abs(d)
    per = jnp.where(ad <= 1.0, 0.5 * d * d, ad - 0.5)
    return jnp.sum(per) / per.size


def _wmse_first_cols(p, t, ncols):
    # F.mse_loss(pred*w, target*w) with w = 2 on the first `ncols` columns.
    col = lax.broadcasted_iota(jnp.int32, p.shape, 1)
    w = jnp.where(col < ncols, 2.0, 1.0).astype(F32)
    d = w * (p - t)
    return jnp.sum(d * d) / d.size


def _wmse_last_cols(p, t, ncols):
    # w = 2 on the last `ncols` columns.
    col = lax.broadcasted_iota(jnp.int32, p.shape, 1)
    w = jnp.where(col >= p.shape[1] - ncols, 2.0, 1.0).astype(F32)
    d = w * (p - t)
    return jnp.sum(d * d) / d.size


def _coord_loss(p, t):
    # 0.7 * MSE + 0.3 * (1 - mean(cosine_similarity(pred, target, dim=1)))
    d = p - t
    mse = jnp.sum(d * d) / d.size
    pn = jnp.sqrt(jnp.sum(p * p, axis=-1, keepdims=True))   # [B, 1]
    tn = jnp.sqrt(jnp.sum(t * t, axis=-1, keepdims=True))   # [B, 1]
    denom = jnp.maximum(pn * tn, 1e-8)
    cos = jnp.sum(p * t, axis=-1, keepdims=True) * pl.reciprocal(denom, approx=True)
    return 0.7 * mse + 0.3 * (1.0 - jnp.sum(cos) / p.shape[0])


def _focal_loss(x, t):
    # focal loss on top of BCE-with-logits (gamma=2, alpha=0.25)
    ce = jnp.maximum(x, 0.0) - x * t + jnp.log1p(jnp.exp(-jnp.abs(x)))
    p_t = jnp.exp(-ce)
    per = 0.25 * (1.0 - p_t) ** 2 * ce
    return jnp.sum(per) / per.size


def _graph_loss(src_all, dst_all, n):
    """0.7 * MSE(adjacency) + 0.3 * MSE(normalized Laplacians).

    src_all: (2, E) int32, row `g` = source node per edge of graph g.
    dst_all: (E, 2) int32, col `g` = destination node per edge of graph g.
    Sentinel index == n marks padding edges (matches no node).
    Adjacency + D^{-1/2} A D^{-1/2} are produced by two tiny MXU matmuls on
    (dinv-scaled) one-hots -- no XLU transposes, no eye*dinv reduce trick.
    """
    e = src_all.shape[1]
    eye = (lax.broadcasted_iota(jnp.int32, (n, n), 0)
           == lax.broadcasted_iota(jnp.int32, (n, n), 1)).astype(F32)
    iota_ne = lax.broadcasted_iota(jnp.int32, (n, e), 0)   # node id along rows
    iota_en = lax.broadcasted_iota(jnp.int32, (e, n), 1)   # node id along lanes
    dims = (((1,), (0,)), ((), ()))                        # plain (M,K)x(K,N)

    def one_graph(g):
        src = src_all[g:g + 1, :]                          # (1, E)
        dst = dst_all[:, g:g + 1]                          # (E, 1)
        src_oh = iota_ne == src                            # (N, E) bool
        dst_oh = iota_en == dst                            # (E, N) bool
        src_b, dst_b = src_oh.astype(BF16), dst_oh.astype(BF16)
        src_f, dst_f = src_oh.astype(F32), dst_oh.astype(F32)

        # out-degree (duplicate edges counted), exact.
        deg = jnp.sum(src_f, axis=1, keepdims=True)                           # (N, 1)
        # dense adjacency: exact bf16 0/1 operands, f32 accumulation.
        adj = lax.dot_general(src_b, dst_b, dims, preferred_element_type=F32)  # (N, N)

        dinv = lax.rsqrt(deg + 1e-8)                                           # (N, 1)
        # dinv gathered onto the dst side of each edge (exact: same rsqrt of
        # the same integer degree; sentinel rows are zeroed by dst_f anyway).
        deg_dst = jnp.sum((src == dst).astype(F32), axis=1, keepdims=True)     # (E, 1)
        dinv_e = lax.rsqrt(deg_dst + 1e-8)                                     # (E, 1)

        # D^{-1/2} A D^{-1/2} from dinv-scaled one-hots (second tiny matmul).
        nadj = lax.dot_general(src_f * dinv, dst_f * dinv_e, dims,
                               preferred_element_type=F32)                     # (N, N)
        nlap = eye * (deg * dinv * dinv) - nadj
        return adj, nlap

    pa, pnl = one_graph(0)
    ta, tnl = one_graph(1)
    da = pa - ta
    dl = pnl - tnl
    return 0.7 * jnp.sum(da * da) / da.size + 0.3 * jnp.sum(dl * dl) / dl.size


# ----------------------------------------------------------------------------
# Fused kernel: all components + total in one pallas_call
# ----------------------------------------------------------------------------

def _fused_loss_kernel(pp_ref, pt_ref, sp_ref, st_ref, src_ref, dst_ref,
                       o_ref, *, cfg: LossConfig, num_nodes: int, widths):
    w_val, w_ks, w_cc, w_mt, w_co, w_at = widths
    sp = sp_ref[...].astype(F32)        # (B, PAD) pred slab
    st = st_ref[...].astype(F32)        # (B, PAD) target slab

    # static slab offsets (python ints -> free static slices)
    o_val = 0
    o_ks = o_val + w_val
    o_cc = o_ks + w_ks
    o_mt = o_cc + w_cc
    o_co = o_mt + w_mt
    o_at = o_co + w_co

    def sec(a, off, w):
        return a[:, off:off + w]

    policy_loss = _soft_ce(pp_ref[...].astype(F32), pt_ref[...].astype(F32))
    value_loss = _huber_mean(sec(sp, o_val, w_val), sec(st, o_val, w_val))
    king_safety = _wmse_first_cols(sec(sp, o_ks, w_ks), sec(st, o_ks, w_ks), 3)
    center = _huber_mean(sec(sp, o_cc, w_cc), sec(st, o_cc, w_cc))
    material = _wmse_last_cols(sec(sp, o_mt, w_mt), sec(st, o_mt, w_mt), 2)
    coordination = _coord_loss(sec(sp, o_co, w_co), sec(st, o_co, w_co))
    attack = _focal_loss(sec(sp, o_at, w_at), sec(st, o_at, w_at))
    graph_loss = _graph_loss(src_ref[...], dst_ref[...], num_nodes)

    total_pag = (cfg.king_safety_weight * king_safety
                 + cfg.center_control_weight * center
                 + cfg.material_balance_weight * material
                 + cfg.piece_coordination_weight * coordination
                 + cfg.attack_pattern_weight * attack)
    # model=None in this setup -> no entropy regularization term.
    # TODO(synk): teacher-model KL distillation path not implemented (teacher=None).
    total = (cfg.policy_weight * policy_loss
             + cfg.value_weight * value_loss
             + cfg.pag_weight * total_pag
             + cfg.graph_weight * graph_loss)

    o_ref[0, _POLICY] = policy_loss
    o_ref[0, _VALUE] = value_loss
    o_ref[0, _KS] = king_safety
    o_ref[0, _CC] = center
    o_ref[0, _MAT] = material
    o_ref[0, _COORD] = coordination
    o_ref[0, _ATTACK] = attack
    o_ref[0, _GRAPH] = graph_loss
    o_ref[0, _TOTAL] = total


_VMEM_SPEC = pl.BlockSpec(memory_space=pltpu.MemorySpace.VMEM)
_SMEM_SPEC = pl.BlockSpec(memory_space=pltpu.MemorySpace.SMEM)


def pag_policy_value_loss(policy_pred, value_pred, pag_pred,
                          policy_target, value_target, pag_target,
                          config=LossConfig(), num_nodes=64):
    """Forward pass of PAGPolicyValueLoss (teacher=None, model=None)."""
    # ---- pack the tiny pred/target tensors into two lane-dense slabs -------
    feat_names = ('king_safety', 'center_control', 'material_tension',
                  'coordination', 'attack_patterns')
    pred_parts = [jnp.asarray(value_pred, F32)] + \
                 [jnp.asarray(pag_pred[n], F32) for n in feat_names]
    targ_parts = [jnp.asarray(value_target, F32)] + \
                 [jnp.asarray(pag_target[n], F32) for n in feat_names]
    widths = tuple(int(p.shape[1]) for p in pred_parts)
    tot_w = sum(widths)
    pad_w = max(128, -(-tot_w // 128) * 128)

    def pack(parts):
        slab = jnp.concatenate(parts, axis=1)
        return jnp.pad(slab, ((0, 0), (0, pad_w - tot_w)))

    pred_slab, targ_slab = pack(pred_parts), pack(targ_parts)

    # ---- edge indices: pad E to a multiple of 128 with sentinel == num_nodes
    # TODO(synk): torch sizes the adjacency as edge_index.max()+1 (data
    # dependent); here num_nodes is a static constant chosen by the caller.
    if 'edge_index' in pag_pred and 'edge_index' in pag_target:
        ep = jnp.asarray(pag_pred['edge_index'], jnp.int32)
        et = jnp.asarray(pag_target['edge_index'], jnp.int32)
    else:
        # identical dummy graphs -> graph_loss == 0 (matches torch fallback)
        ep = et = jnp.full((2, 8), num_nodes, jnp.int32)
    e_max = max(ep.shape[1], et.shape[1])
    e_pad = max(128, -(-e_max // 128) * 128)

    def pad_edges(ei):
        return jnp.pad(ei, ((0, 0), (0, e_pad - ei.shape[1])),
                       constant_values=num_nodes)

    epp, etp = pad_edges(ep), pad_edges(et)
    src_all = jnp.concatenate([epp[0:1, :], etp[0:1, :]], axis=0)        # (2, E)
    dst_all = jnp.concatenate([epp[1:2, :].T, etp[1:2, :].T], axis=1)    # (E, 2)

    kernel = functools.partial(_fused_loss_kernel, cfg=config,
                               num_nodes=num_nodes, widths=widths)
    # TODO(synk): at large batch sizes, add a batch grid axis with
    # dimension_semantics=("parallel",) to use both v7x TensorCores.
    out = pl.pallas_call(
        kernel,
        out_shape=jax.ShapeDtypeStruct((1, _NUM_OUT), F32),
        in_specs=[_VMEM_SPEC] * 6,
        out_specs=_SMEM_SPEC,
    )(policy_pred, policy_target, pred_slab, targ_slab, src_all, dst_all)

    components = {
        'policy_loss': out[0, _POLICY],
        'value_loss': out[0, _VALUE],
        'pag_king_safety_loss': out[0, _KS],
        'pag_center_control_loss': out[0, _CC],
        'pag_material_balance_loss': out[0, _MAT],
        'pag_coordination_loss': out[0, _COORD],
        'pag_attack_patterns_loss': out[0, _ATTACK],
        'graph_loss': out[0, _GRAPH],
        'total_loss': out[0, _TOTAL],
    }
    return components['total_loss'], components


# ----------------------------------------------------------------------------
# Pure-JAX reference (for correctness check)
# ----------------------------------------------------------------------------

def _edge_index_to_adj_ref(edge_index, num_nodes):
    vals = jnp.ones((edge_index.shape[1],), F32)
    adj = jnp.zeros((num_nodes, num_nodes), F32)
    return adj.at[edge_index[0], edge_index[1]].add(vals)


def _reference(policy_pred, value_pred, pag_pred, policy_target, value_target,
               pag_target, config=LossConfig(), num_nodes=64):
    def soft_ce(x, t):
        logp = jax.nn.log_softmax(x, axis=-1)
        return jnp.mean(-jnp.sum(t * logp, axis=-1))

    def huber(p, t):
        d = p - t
        ad = jnp.abs(d)
        return jnp.mean(jnp.where(ad <= 1.0, 0.5 * d * d, ad - 0.5))

    def wmse(p, t, w):
        return jnp.mean((w * p - w * t) ** 2)

    def coord(p, t):
        mse = jnp.mean((p - t) ** 2)
        pn = jnp.linalg.norm(p, axis=-1)
        tn = jnp.linalg.norm(t, axis=-1)
        cos = jnp.sum(p * t, axis=-1) / jnp.maximum(pn * tn, 1e-8)
        return 0.7 * mse + 0.3 * (1.0 - jnp.mean(cos))

    def focal(x, t):
        ce = jnp.maximum(x, 0.0) - x * t + jnp.log1p(jnp.exp(-jnp.abs(x)))
        p_t = jnp.exp(-ce)
        return jnp.mean(0.25 * (1.0 - p_t) ** 2 * ce)

    def graph(pa, ta):
        eye = jnp.eye(pa.shape[0], dtype=F32)

        def norm_lap(adj):
            deg = jnp.sum(adj, axis=1, keepdims=True)
            lap = eye * deg - adj
            dinv = eye * (1.0 / jnp.sqrt(deg + 1e-8))
            return dinv @ lap @ dinv

        mse = jnp.mean((pa - ta) ** 2)
        lap_mse = jnp.mean((norm_lap(pa) - norm_lap(ta)) ** 2)
        return 0.7 * mse + 0.3 * lap_mse

    policy_loss = soft_ce(policy_pred, policy_target)
    value_loss = huber(value_pred, value_target)
    ks_w = jnp.ones_like(pag_pred['king_safety']).at[:, :3].set(2.0)
    mt_w = jnp.ones_like(pag_pred['material_tension']).at[:, -2:].set(2.0)
    king_safety = wmse(pag_pred['king_safety'], pag_target['king_safety'], ks_w)
    center = huber(pag_pred['center_control'], pag_target['center_control'])
    material = wmse(pag_pred['material_tension'], pag_target['material_tension'], mt_w)
    coordination = coord(pag_pred['coordination'], pag_target['coordination'])
    attack = focal(pag_pred['attack_patterns'], pag_target['attack_patterns'])
    total_pag = (config.king_safety_weight * king_safety
                 + config.center_control_weight * center
                 + config.material_balance_weight * material
                 + config.piece_coordination_weight * coordination
                 + config.attack_pattern_weight * attack)
    graph_loss = graph(_edge_index_to_adj_ref(pag_pred['edge_index'], num_nodes),
                       _edge_index_to_adj_ref(pag_target['edge_index'], num_nodes))
    return (config.policy_weight * policy_loss
            + config.value_weight * value_loss
            + config.pag_weight * total_pag
            + config.graph_weight * graph_loss)


# ----------------------------------------------------------------------------
# Main
# ----------------------------------------------------------------------------

if __name__ == "__main__":
    key = jax.random.PRNGKey(0)
    ks = jax.random.split(key, 16)

    B, M = 4, 512            # batch, num_moves
    N_NODES, E = 64, 96      # graph nodes (chess squares), edges

    policy_pred = jax.random.normal(ks[0], (B, M), F32)
    policy_target = jax.nn.softmax(jax.random.normal(ks[1], (B, M), F32), axis=-1)
    value_pred = jax.random.normal(ks[2], (B, 1), F32)
    value_target = jnp.tanh(jax.random.normal(ks[3], (B, 1), F32))

    def edge_index(k):
        ei = jax.random.randint(k, (2, E), 0, N_NODES, dtype=jnp.int32)
        return ei.at[:, -1].set(N_NODES - 1)   # ensure max node index == N_NODES-1

    pag_pred = {
        'king_safety':      jax.random.normal(ks[4], (B, 8), F32),
        'center_control':   jax.random.normal(ks[5], (B, 16), F32),
        'material_tension': jax.random.normal(ks[6], (B, 8), F32),
        'coordination':     jax.random.normal(ks[7], (B, 32), F32),
        'attack_patterns':  jax.random.normal(ks[8], (B, 16), F32),
        'edge_index':       edge_index(ks[9]),
    }
    pag_target = {
        'king_safety':      jax.random.normal(ks[10], (B, 8), F32),
        'center_control':   jax.random.normal(ks[11], (B, 16), F32),
        'material_tension': jax.random.normal(ks[12], (B, 8), F32),
        'coordination':     jax.random.normal(ks[13], (B, 32), F32),
        'attack_patterns':  jax.random.bernoulli(ks[14], 0.3, (B, 16)).astype(F32),
        'edge_index':       edge_index(ks[15]),
    }

    total, comps = pag_policy_value_loss(policy_pred, value_pred, pag_pred,
                                         policy_target, value_target, pag_target,
                                         num_nodes=N_NODES)
    total = jax.block_until_ready(total)

    ref = jax.block_until_ready(
        _reference(policy_pred, value_pred, pag_pred,
                   policy_target, value_target, pag_target, num_nodes=N_NODES))

    assert jnp.isfinite(total), "non-finite loss"
    assert jnp.allclose(total, ref, rtol=1e-2, atol=1e-2), (total, ref)
    print("KERNEL_OK")
</pallas_src>

<mosaic_0001>
module attributes {stable_mosaic.version = 11 : i64} {
  func.func @_fused_loss_kernel(%arg0: memref<4x512xf32, #tpu.memory_space<vmem>>, %arg1: memref<4x512xf32, #tpu.memory_space<vmem>>, %arg2: memref<4x128xf32, #tpu.memory_space<vmem>>, %arg3: memref<4x128xf32, #tpu.memory_space<vmem>>, %arg4: memref<2x128xi32, #tpu.memory_space<vmem>>, %arg5: memref<128x2xi32, #tpu.memory_space<vmem>>, %arg6: memref<1x9xf32, #tpu.memory_space<smem>>) attributes {dimension_semantics = [], scalar_prefetch = 0 : i64, scratch_operands = 0 : i64, tpu.core_type = #tpu.core_type<tc>} {
    %c0 = arith.constant 0 : index
    %c0_0 = arith.constant 0 : index
    %0 = vector.load %arg2[%c0, %c0_0] : memref<4x128xf32, #tpu.memory_space<vmem>>, vector<4x128xf32>
    %c0_1 = arith.constant 0 : index
    %c0_2 = arith.constant 0 : index
    %1 = vector.load %arg3[%c0_1, %c0_2] : memref<4x128xf32, #tpu.memory_space<vmem>>, vector<4x128xf32>
    %c0_3 = arith.constant 0 : index
    %c0_4 = arith.constant 0 : index
    %2 = vector.load %arg0[%c0_3, %c0_4] : memref<4x512xf32, #tpu.memory_space<vmem>>, vector<4x512xf32>
    %c0_5 = arith.constant 0 : index
    %c0_6 = arith.constant 0 : index
    %3 = vector.load %arg1[%c0_5, %c0_6] : memref<4x512xf32, #tpu.memory_space<vmem>>, vector<4x512xf32>
    %cst = arith.constant dense<0xFF800000> : vector<4xf32>
    %4 = vector.multi_reduction <maximumf>, %2, %cst [1] : vector<4x512xf32> to vector<4xf32>
    %5 = vector.shape_cast %4 : vector<4xf32> to vector<4x1xf32>
    %6 = vector.broadcast %5 : vector<4x1xf32> to vector<4x512xf32>
    %7 = arith.subf %2, %6 : vector<4x512xf32>
    %8 = math.exp %7 : vector<4x512xf32>
    %cst_7 = arith.constant dense<0.000000e+00> : vector<4xf32>
    %9 = vector.multi_reduction <add>, %8, %cst_7 [1] : vector<4x512xf32> to vector<4xf32>
    %10 = vector.shape_cast %9 : vector<4xf32> to vector<4x1xf32>
    %11 = math.log %10 : vector<4x1xf32>
    %12 = arith.addf %11, %5 : vector<4x1xf32>
    %cst_8 = arith.constant dense<0.000000e+00> : vector<4xf32>
    %13 = vector.multi_reduction <add>, %3, %cst_8 [1] : vector<4x512xf32> to vector<4xf32>
    %14 = vector.shape_cast %13 : vector<4xf32> to vector<4x1xf32>
    %15 = arith.mulf %3, %2 : vector<4x512xf32>
    %cst_9 = arith.constant dense<0.000000e+00> : vector<4xf32>
    %16 = vector.multi_reduction <add>, %15, %cst_9 [1] : vector<4x512xf32> to vector<4xf32>
    %17 = vector.shape_cast %16 : vector<4xf32> to vector<4x1xf32>
    %18 = arith.mulf %12, %14 : vector<4x1xf32>
    %19 = arith.subf %18, %17 : vector<4x1xf32>
    %20 = vector.shape_cast %19 : vector<4x1xf32> to vector<1x4x1xf32>
    %cst_10 = arith.constant dense<0.000000e+00> : vector<1xf32>
    %21 = vector.multi_reduction <add>, %20, %cst_10 [1, 2] : vector<1x4x1xf32> to vector<1xf32>
    %22 = vector.shape_cast %21 : vector<1xf32> to vector<1x1x1xf32>
    %23 = vector.extract %22[0, 0, 0] : f32 from vector<1x1x1xf32>
    %cst_11 = arith.constant 4.000000e+00 : f32
    %24 = arith.divf %23, %cst_11 : f32
    %25 = vector.extract_strided_slice %0 {offsets = [0, 0], sizes = [4, 1], strides = [1, 1]} : vector<4x128xf32> to vector<4x1xf32>
    %26 = vector.extract_strided_slice %1 {offsets = [0, 0], sizes = [4, 1], strides = [1, 1]} : vector<4x128xf32> to vector<4x1xf32>
    %27 = arith.subf %25, %26 : vector<4x1xf32>
    %28 = math.absf %27 : vector<4x1xf32>
    %cst_12 = arith.constant 1.000000e+00 : f32
    %29 = vector.broadcast %cst_12 : f32 to vector<4x1xf32>
    %30 = arith.cmpf ole, %28, %29 : vector<4x1xf32>
    %cst_13 = arith.constant 5.000000e-01 : f32
    %31 = vector.broadcast %cst_13 : f32 to vector<4x1xf32>
    %32 = arith.mulf %31, %27 : vector<4x1xf32>
    %33 = arith.mulf %32, %27 : vector<4x1xf32>
    %cst_14 = arith.constant 5.000000e-01 : f32
    %34 = vector.broadcast %cst_14 : f32 to vector<4x1xf32>
    %35 = arith.subf %28, %34 : vector<4x1xf32>
    %36 = arith.select %30, %33, %35 : vector<4x1xi1>, vector<4x1xf32>
    %37 = vector.shape_cast %36 : vector<4x1xf32> to vector<1x4x1xf32>
    %cst_15 = arith.constant dense<0.000000e+00> : vector<1xf32>
    %38 = vector.multi_reduction <add>, %37, %cst_15 [1, 2] : vector<1x4x1xf32> to vector<1xf32>
    %39 = vector.shape_cast %38 : vector<1xf32> to vector<1x1x1xf32>
    %40 = vector.extract %39[0, 0, 0] : f32 from vector<1x1x1xf32>
    %cst_16 = arith.constant 4.000000e+00 : f32
    %41 = arith.divf %40, %cst_16 : f32
    %42 = vector.extract_strided_slice %0 {offsets = [0, 1], sizes = [4, 8], strides = [1, 1]} : vector<4x128xf32> to vector<4x8xf32>
    %43 = vector.extract_strided_slice %1 {offsets = [0, 1], sizes = [4, 8], strides = [1, 1]} : vector<4x128xf32> to vector<4x8xf32>
    %44 = tpu.iota {dimensions = array<i32: 1>} : vector<4x8xi32>
    %c3_i32 = arith.constant 3 : i32
    %45 = vector.broadcast %c3_i32 : i32 to vector<4x8xi32>
    %46 = arith.cmpi slt, %44, %45 : vector<4x8xi32>
    %cst_17 = arith.constant 2.000000e+00 : f32
    %cst_18 = arith.constant 1.000000e+00 : f32
    %47 = vector.broadcast %cst_17 : f32 to vector<4x8xf32>
    %48 = vector.broadcast %cst_18 : f32 to vector<4x8xf32>
    %49 = arith.select %46, %47, %48 : vector<4x8xi1>, vector<4x8xf32>
    %50 = arith.subf %42, %43 : vector<4x8xf32>
    %51 = arith.mulf %49, %50 : vector<4x8xf32>
    %52 = arith.mulf %51, %51 : vector<4x8xf32>
    %53 = vector.shape_cast %52 : vector<4x8xf32> to vector<1x4x8xf32>
    %cst_19 = arith.constant dense<0.000000e+00> : vector<1xf32>
    %54 = vector.multi_reduction <add>, %53, %cst_19 [1, 2] : vector<1x4x8xf32> to vector<1xf32>
    %55 = vector.shape_cast %54 : vector<1xf32> to vector<1x1x1xf32>
    %56 = vector.extract %55[0, 0, 0] : f32 from vector<1x1x1xf32>
    %cst_20 = arith.constant 3.200000e+01 : f32
    %57 = arith.divf %56, %cst_20 : f32
    %58 = vector.extract_strided_slice %0 {offsets = [0, 9], sizes = [4, 16], strides = [1, 1]} : vector<4x128xf32> to vector<4x16xf32>
    %59 = vector.extract_strided_slice %1 {offsets = [0, 9], sizes = [4, 16], strides = [1, 1]} : vector<4x128xf32> to vector<4x16xf32>
    %60 = arith.subf %58, %59 : vector<4x16xf32>
    %61 = math.absf %60 : vector<4x16xf32>
    %cst_21 = arith.constant 1.000000e+00 : f32
    %62 = vector.broadcast %cst_21 : f32 to vector<4x16xf32>
    %63 = arith.cmpf ole, %61, %62 : vector<4x16xf32>
    %cst_22 = arith.constant 5.000000e-01 : f32
    %64 = vector.broadcast %cst_22 : f32 to vector<4x16xf32>
    %65 = arith.mulf %64, %60 : vector<4x16xf32>
    %66 = arith.mulf %65, %60 : vector<4x16xf32>
    %cst_23 = arith.constant 5.000000e-01 : f32
    %67 = vector.broadcast %cst_23 : f32 to vector<4x16xf32>
    %68 = arith.subf %61, %67 : vector<4x16xf32>
    %69 = arith.select %63, %66, %68 : vector<4x16xi1>, vector<4x16xf32>
    %70 = vector.shape_cast %69 : vector<4x16xf32> to vector<1x4x16xf32>
    %cst_24 = arith.constant dense<0.000000e+00> : vector<1xf32>
    %71 = vector.multi_reduction <add>, %70, %cst_24 [1, 2] : vector<1x4x16xf32> to vector<1xf32>
    %72 = vector.shape_cast %71 : vector<1xf32> to vector<1x1x1xf32>
    %73 = vector.extract %72[0, 0, 0] : f32 from vector<1x1x1xf32>
    %cst_25 = arith.constant 6.400000e+01 : f32
    %74 = arith.divf %73, %cst_25 : f32
    %75 = vector.extract_strided_slice %0 {offsets = [0, 25], sizes = [4, 8], strides = [1, 1]} : vector<4x128xf32> to vector<4x8xf32>
    %76 = vector.extract_strided_slice %1 {offsets = [0, 25], sizes = [4, 8], strides = [1, 1]} : vector<4x128xf32> to vector<4x8xf32>
    %77 = tpu.iota {dimensions = array<i32: 1>} : vector<4x8xi32>
    %c6_i32 = arith.constant 6 : i32
    %78 = vector.broadcast %c6_i32 : i32 to vector<4x8xi32>
    %79 = arith.cmpi sge, %77, %78 : vector<4x8xi32>
    %cst_26 = arith.constant 2.000000e+00 : f32
    %cst_27 = arith.constant 1.000000e+00 : f32
    %80 = vector.broadcast %cst_26 : f32 to vector<4x8xf32>
    %81 = vector.broadcast %cst_27 : f32 to vector<4x8xf32>
    %82 = arith.select %79, %80, %81 : vector<4x8xi1>, vector<4x8xf32>
    %83 = arith.subf %75, %76 : vector<4x8xf32>
    %84 = arith.mulf %82, %83 : vector<4x8xf32>
    %85 = arith.mulf %84, %84 : vector<4x8xf32>
    %86 = vector.shape_cast %85 : vector<4x8xf32> to vector<1x4x8xf32>
    %cst_28 = arith.constant dense<0.000000e+00> : vector<1xf32>
    %87 = vector.multi_reduction <add>, %86, %cst_28 [1, 2] : vector<1x4x8xf32> to vector<1xf32>
    %88 = vector.shape_cast %87 : vector<1xf32> to vector<1x1x1xf32>
    %89 = vector.extract %88[0, 0, 0] : f32 from vector<1x1x1xf32>
    %cst_29 = arith.constant 3.200000e+01 : f32
    %90 = arith.divf %89, %cst_29 : f32
    %91 = vector.extract_strided_slice %0 {offsets = [0, 33], sizes = [4, 32], strides = [1, 1]} : vector<4x128xf32> to vector<4x32xf32>
    %92 = vector.extract_strided_slice %1 {offsets = [0, 33], sizes = [4, 32], strides = [1, 1]} : vector<4x128xf32> to vector<4x32xf32>
    %93 = arith.subf %91, %92 : vector<4x32xf32>
    %94 = arith.mulf %93, %93 : vector<4x32xf32>
    %95 = vector.shape_cast %94 : vector<4x32xf32> to vector<1x4x32xf32>
    %cst_30 = arith.constant dense<0.000000e+00> : vector<1xf32>
    %96 = vector.multi_reduction <add>, %95, %cst_30 [1, 2] : vector<1x4x32xf32> to vector<1xf32>
    %97 = vector.shape_cast %96 : vector<1xf32> to vector<1x1x1xf32>
    %98 = vector.extract %97[0, 0, 0] : f32 from vector<1x1x1xf32>
    %cst_31 = arith.constant 1.280000e+02 : f32
    %99 = arith.divf %98, %cst_31 : f32
    %100 = arith.mulf %91, %91 : vector<4x32xf32>
    %cst_32 = arith.constant dense<0.000000e+00> : vector<4xf32>
    %101 = vector.multi_reduction <add>, %100, %cst_32 [1] : vector<4x32xf32> to vector<4xf32>
    %102 = vector.shape_cast %101 : vector<4xf32> to vector<4x1xf32>
    %103 = math.sqrt %102 : vector<4x1xf32>
    %104 = arith.mulf %92, %92 : vector<4x32xf32>
    %cst_33 = arith.constant dense<0.000000e+00> : vector<4xf32>
    %105 = vector.multi_reduction <add>, %104, %cst_33 [1] : vector<4x32xf32> to vector<4xf32>
    %106 = vector.shape_cast %105 : vector<4xf32> to vector<4x1xf32>
    %107 = math.sqrt %106 : vector<4x1xf32>
    %108 = arith.mulf %103, %107 : vector<4x1xf32>
    %cst_34 = arith.constant 9.99999993E-9 : f32
    %109 = vector.broadcast %cst_34 : f32 to vector<4x1xf32>
    %110 = arith.maximumf %108, %109 : vector<4x1xf32>
    %111 = arith.mulf %91, %92 : vector<4x32xf32>
    %cst_35 = arith.constant dense<0.000000e+00> : vector<4xf32>
    %112 = vector.multi_reduction <add>, %111, %cst_35 [1] : vector<4x32xf32> to vector<4xf32>
    %113 = vector.shape_cast %112 : vector<4xf32> to vector<4x1xf32>
    %114 = tpu.reciprocal %110 {approx = true} : vector<4x1xf32> -> vector<4x1xf32>
    %115 = arith.mulf %113, %114 : vector<4x1xf32>
    %cst_36 = arith.constant 0.699999988 : f32
    %116 = arith.mulf %cst_36, %99 : f32
    %117 = vector.shape_cast %115 : vector<4x1xf32> to vector<1x4x1xf32>
    %cst_37 = arith.constant dense<0.000000e+00> : vector<1xf32>
    %118 = vector.multi_reduction <add>, %117, %cst_37 [1, 2] : vector<1x4x1xf32> to vector<1xf32>
    %119 = vector.shape_cast %118 : vector<1xf32> to vector<1x1x1xf32>
    %120 = vector.extract %119[0, 0, 0] : f32 from vector<1x1x1xf32>
    %cst_38 = arith.constant 4.000000e+00 : f32
    %121 = arith.divf %120, %cst_38 : f32
    %cst_39 = arith.constant 1.000000e+00 : f32
    %122 = arith.subf %cst_39, %121 : f32
    %cst_40 = arith.constant 3.000000e-01 : f32
    %123 = arith.mulf %cst_40, %122 : f32
    %124 = arith.addf %116, %123 : f32
    %125 = vector.extract_strided_slice %0 {offsets = [0, 65], sizes = [4, 16], strides = [1, 1]} : vector<4x128xf32> to vector<4x16xf32>
    %126 = vector.extract_strided_slice %1 {offsets = [0, 65], sizes = [4, 16], strides = [1, 1]} : vector<4x128xf32> to vector<4x16xf32>
    %cst_41 = arith.constant 0.000000e+00 : f32
    %127 = vector.broadcast %cst_41 : f32 to vector<4x16xf32>
    %128 = arith.maximumf %125, %127 : vector<4x16xf32>
    %129 = arith.mulf %125, %126 : vector<4x16xf32>
    %130 = arith.subf %128, %129 : vector<4x16xf32>
    %131 = math.absf %125 : vector<4x16xf32>
    %cst_42 = arith.constant 0.000000e+00 : f32
    %132 = vector.broadcast %cst_42 : f32 to vector<4x16xf32>
    %133 = arith.subf %132, %131 : vector<4x16xf32>
    %134 = math.exp %133 : vector<4x16xf32>
    %135 = math.log1p %134 : vector<4x16xf32>
    %136 = arith.addf %130, %135 : vector<4x16xf32>
    %cst_43 = arith.constant 0.000000e+00 : f32
    %137 = vector.broadcast %cst_43 : f32 to vector<4x16xf32>
    %138 = arith.subf %137, %136 : vector<4x16xf32>
    %139 = math.exp %138 : vector<4x16xf32>
    %cst_44 = arith.constant 1.000000e+00 : f32
    %140 = vector.broadcast %cst_44 : f32 to vector<4x16xf32>
    %141 = arith.subf %140, %139 : vector<4x16xf32>
    %142 = arith.mulf %141, %141 : vector<4x16xf32>
    %cst_45 = arith.constant 2.500000e-01 : f32
    %143 = vector.broadcast %cst_45 : f32 to vector<4x16xf32>
    %144 = arith.mulf %143, %142 : vector<4x16xf32>
    %145 = arith.mulf %144, %136 : vector<4x16xf32>
    %146 = vector.shape_cast %145 : vector<4x16xf32> to vector<1x4x16xf32>
    %cst_46 = arith.constant dense<0.000000e+00> : vector<1xf32>
    %147 = vector.multi_reduction <add>, %146, %cst_46 [1, 2] : vector<1x4x16xf32> to vector<1xf32>
    %148 = vector.shape_cast %147 : vector<1xf32> to vector<1x1x1xf32>
    %149 = vector.extract %148[0, 0, 0] : f32 from vector<1x1x1xf32>
    %cst_47 = arith.constant 6.400000e+01 : f32
    %150 = arith.divf %149, %cst_47 : f32
    %c0_48 = arith.constant 0 : index
    %c0_49 = arith.constant 0 : index
    %151 = vector.load %arg4[%c0_48, %c0_49] : memref<2x128xi32, #tpu.memory_space<vmem>>, vector<2x128xi32>
    %c0_50 = arith.constant 0 : index
    %c0_51 = arith.constant 0 : index
    %152 = vector.load %arg5[%c0_50, %c0_51] : memref<128x2xi32, #tpu.memory_space<vmem>>, vector<128x2xi32>
    %153 = tpu.iota {dimensions = array<i32: 0>} : vector<64x64xi32>
    %154 = tpu.iota {dimensions = array<i32: 1>} : vector<64x64xi32>
    %155 = arith.cmpi eq, %153, %154 : vector<64x64xi32>
    %156 = arith.extui %155 : vector<64x64xi1> to vector<64x64xi32>
    %157 = arith.sitofp %156 : vector<64x64xi32> to vector<64x64xf32>
    %158 = tpu.iota {dimensions = array<i32: 0>} : vector<64x128xi32>
    %159 = tpu.iota {dimensions = array<i32: 1>} : vector<128x64xi32>
    %160 = vector.extract_strided_slice %151 {offsets = [0, 0], sizes = [1, 128], strides = [1, 1]} : vector<2x128xi32> to vector<1x128xi32>
    %161 = vector.extract_strided_slice %152 {offsets = [0, 0], sizes = [128, 1], strides = [1, 1]} : vector<128x2xi32> to vector<128x1xi32>
    %162 = vector.broadcast %160 : vector<1x128xi32> to vector<64x128xi32>
    %163 = arith.cmpi eq, %158, %162 : vector<64x128xi32>
    %164 = vector.broadcast %161 : vector<128x1xi32> to vector<128x64xi32>
    %165 = arith.cmpi eq, %159, %164 : vector<128x64xi32>
    %166 = arith.extui %163 : vector<64x128xi1> to vector<64x128xi32>
    %167 = arith.sitofp %166 : vector<64x128xi32> to vector<64x128xf32>
    %168 = arith.truncf %167 : vector<64x128xf32> to vector<64x128xbf16>
    %169 = arith.extui %165 : vector<128x64xi1> to vector<128x64xi32>
    %170 = arith.sitofp %169 : vector<128x64xi32> to vector<128x64xf32>
    %171 = arith.truncf %170 : vector<128x64xf32> to vector<128x64xbf16>
    %172 = arith.extui %163 : vector<64x128xi1> to vector<64x128xi32>
    %173 = arith.sitofp %172 : vector<64x128xi32> to vector<64x128xf32>
    %174 = arith.extui %165 : vector<128x64xi1> to vector<128x64xi32>
    %175 = arith.sitofp %174 : vector<128x64xi32> to vector<128x64xf32>
    %cst_52 = arith.constant dense<0.000000e+00> : vector<64xf32>
    %176 = vector.multi_reduction <add>, %173, %cst_52 [1] : vector<64x128xf32> to vector<64xf32>
    %177 = vector.shape_cast %176 : vector<64xf32> to vector<64x1xf32>
    %cst_53 = arith.constant dense<0.000000e+00> : vector<64x64xf32>
    %178 = tpu.matmul %168, %171, %cst_53 {dimension_numbers = #tpu.dot_dimension_numbers<[1], [0], [0], [1], [0, 0, 1, 1], [], []>} : vector<64x128xbf16>, vector<128x64xbf16>, vector<64x64xf32> -> vector<64x64xf32>
    %cst_54 = arith.constant 9.99999993E-9 : f32
    %179 = vector.broadcast %cst_54 : f32 to vector<64x1xf32>
    %180 = arith.addf %177, %179 : vector<64x1xf32>
    %181 = math.rsqrt %180 : vector<64x1xf32>
    %182 = vector.broadcast %160 : vector<1x128xi32> to vector<128x128xi32>
    %183 = vector.broadcast %161 : vector<128x1xi32> to vector<128x128xi32>
    %184 = arith.cmpi eq, %182, %183 : vector<128x128xi32>
    %185 = arith.extui %184 : vector<128x128xi1> to vector<128x128xi32>
    %186 = arith.sitofp %185 : vector<128x128xi32> to vector<128x128xf32>
    %cst_55 = arith.constant dense<0.000000e+00> : vector<128xf32>
    %187 = vector.multi_reduction <add>, %186, %cst_55 [1] : vector<128x128xf32> to vector<128xf32>
    %188 = vector.shape_cast %187 : vector<128xf32> to vector<128x1xf32>
    %cst_56 = arith.constant 9.99999993E-9 : f32
    %189 = vector.broadcast %cst_56 : f32 to vector<128x1xf32>
    %190 = arith.addf %188, %189 : vector<128x1xf32>
    %191 = math.rsqrt %190 : vector<128x1xf32>
    %192 = vector.broadcast %181 : vector<64x1xf32> to vector<64x128xf32>
    %193 = arith.mulf %173, %192 : vector<64x128xf32>
    %194 = vector.broadcast %191 : vector<128x1xf32> to vector<128x64xf32>
    %195 = arith.mulf %175, %194 : vector<128x64xf32>
    %cst_57 = arith.constant dense<0.000000e+00> : vector<64x64xf32>
    %196 = tpu.matmul %193, %195, %cst_57 {dimension_numbers = #tpu.dot_dimension_numbers<[1], [0], [0], [1], [0, 0, 1, 1], [], []>} : vector<64x128xf32>, vector<128x64xf32>, vector<64x64xf32> -> vector<64x64xf32>
    %197 = arith.mulf %177, %181 : vector<64x1xf32>
    %198 = arith.mulf %197, %181 : vector<64x1xf32>
    %199 = vector.broadcast %198 : vector<64x1xf32> to vector<64x64xf32>
    %200 = arith.mulf %157, %199 : vector<64x64xf32>
    %201 = arith.subf %200, %196 : vector<64x64xf32>
    %202 = vector.extract_strided_slice %151 {offsets = [1, 0], sizes = [1, 128], strides = [1, 1]} : vector<2x128xi32> to vector<1x128xi32>
    %203 = vector.extract_strided_slice %152 {offsets = [0, 1], sizes = [128, 1], strides = [1, 1]} : vector<128x2xi32> to vector<128x1xi32>
    %204 = vector.broadcast %202 : vector<1x128xi32> to vector<64x128xi32>
    %205 = arith.cmpi eq, %158, %204 : vector<64x128xi32>
    %206 = vector.broadcast %203 : vector<128x1xi32> to vector<128x64xi32>
    %207 = arith.cmpi eq, %159, %206 : vector<128x64xi32>
    %208 = arith.extui %205 : vector<64x128xi1> to vector<64x128xi32>
    %209 = arith.sitofp %208 : vector<64x128xi32> to vector<64x128xf32>
    %210 = arith.truncf %209 : vector<64x128xf32> to vector<64x128xbf16>
    %211 = arith.extui %207 : vector<128x64xi1> to vector<128x64xi32>
    %212 = arith.sitofp %211 : vector<128x64xi32> to vector<128x64xf32>
    %213 = arith.truncf %212 : vector<128x64xf32> to vector<128x64xbf16>
    %214 = arith.extui %205 : vector<64x128xi1> to vector<64x128xi32>
    %215 = arith.sitofp %214 : vector<64x128xi32> to vector<64x128xf32>
    %216 = arith.extui %207 : vector<128x64xi1> to vector<128x64xi32>
    %217 = arith.sitofp %216 : vector<128x64xi32> to vector<128x64xf32>
    %cst_58 = arith.constant dense<0.000000e+00> : vector<64xf32>
    %218 = vector.multi_reduction <add>, %215, %cst_58 [1] : vector<64x128xf32> to vector<64xf32>
    %219 = vector.shape_cast %218 : vector<64xf32> to vector<64x1xf32>
    %cst_59 = arith.constant dense<0.000000e+00> : vector<64x64xf32>
    %220 = tpu.matmul %210, %213, %cst_59 {dimension_numbers = #tpu.dot_dimension_numbers<[1], [0], [0], [1], [0, 0, 1, 1], [], []>} : vector<64x128xbf16>, vector<128x64xbf16>, vector<64x64xf32> -> vector<64x64xf32>
    %cst_60 = arith.constant 9.99999993E-9 : f32
    %221 = vector.broadcast %cst_60 : f32 to vector<64x1xf32>
    %222 = arith.addf %219, %221 : vector<64x1xf32>
    %223 = math.rsqrt %222 : vector<64x1xf32>
    %224 = vector.broadcast %202 : vector<1x128xi32> to vector<128x128xi32>
    %225 = vector.broadcast %203 : vector<128x1xi32> to vector<128x128xi32>
    %226 = arith.cmpi eq, %224, %225 : vector<128x128xi32>
    %227 = arith.extui %226 : vector<128x128xi1> to vector<128x128xi32>
    %228 = arith.sitofp %227 : vector<128x128xi32> to vector<128x128xf32>
    %cst_61 = arith.constant dense<0.000000e+00> : vector<128xf32>
    %229 = vector.multi_reduction <add>, %228, %cst_61 [1] : vector<128x128xf32> to vector<128xf32>
    %230 = vector.shape_cast %229 : vector<128xf32> to vector<128x1xf32>
    %cst_62 = arith.constant 9.99999993E-9 : f32
    %231 = vector.broadcast %cst_62 : f32 to vector<128x1xf32>
    %232 = arith.addf %230, %231 : vector<128x1xf32>
    %233 = math.rsqrt %232 : vector<128x1xf32>
    %234 = vector.broadcast %223 : vector<64x1xf32> to vector<64x128xf32>
    %235 = arith.mulf %215, %234 : vector<64x128xf32>
    %236 = vector.broadcast %233 : vector<128x1xf32> to vector<128x64xf32>
    %237 = arith.mulf %217, %236 : vector<128x64xf32>
    %cst_63 = arith.constant dense<0.000000e+00> : vector<64x64xf32>
    %238 = tpu.matmul %235, %237, %cst_63 {dimension_numbers = #tpu.dot_dimension_numbers<[1], [0], [0], [1], [0, 0, 1, 1], [], []>} : vector<64x128xf32>, vector<128x64xf32>, vector<64x64xf32> -> vector<64x64xf32>
    %239 = arith.mulf %219, %223 : vector<64x1xf32>
    %240 = arith.mulf %239, %223 : vector<64x1xf32>
    %241 = vector.broadcast %240 : vector<64x1xf32> to vector<64x64xf32>
    %242 = arith.mulf %157, %241 : vector<64x64xf32>
    %243 = arith.subf %242, %238 : vector<64x64xf32>
    %244 = arith.subf %178, %220 : vector<64x64xf32>
    %245 = arith.subf %201, %243 : vector<64x64xf32>
    %246 = arith.mulf %244, %244 : vector<64x64xf32>
    %247 = vector.shape_cast %246 : vector<64x64xf32> to vector<1x64x64xf32>
    %cst_64 = arith.constant dense<0.000000e+00> : vector<1xf32>
    %248 = vector.multi_reduction <add>, %247, %cst_64 [1, 2] : vector<1x64x64xf32> to vector<1xf32>
    %249 = vector.shape_cast %248 : vector<1xf32> to vector<1x1x1xf32>
    %250 = vector.extract %249[0, 0, 0] : f32 from vector<1x1x1xf32>
    %cst_65 = arith.constant 0.699999988 : f32
    %251 = arith.mulf %cst_65, %250 : f32
    %cst_66 = arith.constant 4.096000e+03 : f32
    %252 = arith.divf %251, %cst_66 : f32
    %253 = arith.mulf %245, %245 : vector<64x64xf32>
    %254 = vector.shape_cast %253 : vector<64x64xf32> to vector<1x64x64xf32>
    %cst_67 = arith.constant dense<0.000000e+00> : vector<1xf32>
    %255 = vector.multi_reduction <add>, %254, %cst_67 [1, 2] : vector<1x64x64xf32> to vector<1xf32>
    %256 = vector.shape_cast %255 : vector<1xf32> to vector<1x1x1xf32>
    %257 = vector.extract %256[0, 0, 0] : f32 from vector<1x1x1xf32>
    %cst_68 = arith.constant 3.000000e-01 : f32
    %258 = arith.mulf %cst_68, %257 : f32
    %cst_69 = arith.constant 4.096000e+03 : f32
    %259 = arith.divf %258, %cst_69 : f32
    %260 = arith.addf %252, %259 : f32
    %cst_70 = arith.constant 1.500000e+00 : f32
    %261 = arith.mulf %cst_70, %57 : f32
    %cst_71 = arith.constant 1.000000e+00 : f32
    %262 = arith.mulf %cst_71, %74 : f32
    %263 = arith.addf %261, %262 : f32
    %cst_72 = arith.constant 5.000000e+00 : f32
    %264 = arith.mulf %cst_72, %90 : f32
    %265 = arith.addf %263, %264 : f32
    %cst_73 = arith.constant 1.000000e+00 : f32
    %266 = arith.mulf %cst_73, %124 : f32
    %267 = arith.addf %265, %266 : f32
    %cst_74 = arith.constant 1.500000e+00 : f32
    %268 = arith.mulf %cst_74, %150 : f32
    %269 = arith.addf %267, %268 : f32
    %cst_75 = arith.constant 1.000000e+00 : f32
    %270 = arith.mulf %cst_75, %24 : f32
    %cst_76 = arith.constant 1.000000e+00 : f32
    %271 = arith.mulf %cst_76, %41 : f32
    %272 = arith.addf %270, %271 : f32
    %cst_77 = arith.constant 2.000000e+00 : f32
    %273 = arith.mulf %cst_77, %269 : f32
    %274 = arith.addf %272, %273 : f32
    %cst_78 = arith.constant 1.000000e+00 : f32
    %275 = arith.mulf %cst_78, %260 : f32
    %276 = arith.addf %274, %275 : f32
    %c0_79 = arith.constant 0 : index
    %c0_80 = arith.constant 0 : index
    %277 = memref.load %arg6[%c0_79, %c0_80] : memref<1x9xf32, #tpu.memory_space<smem>>
    memref.store %24, %arg6[%c0_79, %c0_80] : memref<1x9xf32, #tpu.memory_space<smem>>
    %c0_81 = arith.constant 0 : index
    %c1 = arith.constant 1 : index
    %278 = memref.load %arg6[%c0_81, %c1] : memref<1x9xf32, #tpu.memory_space<smem>>
    memref.store %41, %arg6[%c0_81, %c1] : memref<1x9xf32, #tpu.memory_space<smem>>
    %c0_82 = arith.constant 0 : index
    %c2 = arith.constant 2 : index
    %279 = memref.load %arg6[%c0_82, %c2] : memref<1x9xf32, #tpu.memory_space<smem>>
    memref.store %57, %arg6[%c0_82, %c2] : memref<1x9xf32, #tpu.memory_space<smem>>
    %c0_83 = arith.constant 0 : index
    %c3 = arith.constant 3 : index
    %280 = memref.load %arg6[%c0_83, %c3] : memref<1x9xf32, #tpu.memory_space<smem>>
    memref.store %74, %arg6[%c0_83, %c3] : memref<1x9xf32, #tpu.memory_space<smem>>
    %c0_84 = arith.constant 0 : index
    %c4 = arith.constant 4 : index
    %281 = memref.load %arg6[%c0_84, %c4] : memref<1x9xf32, #tpu.memory_space<smem>>
    memref.store %90, %arg6[%c0_84, %c4] : memref<1x9xf32, #tpu.memory_space<smem>>
    %c0_85 = arith.constant 0 : index
    %c5 = arith.constant 5 : index
    %282 = memref.load %arg6[%c0_85, %c5] : memref<1x9xf32, #tpu.memory_space<smem>>
    memref.store %124, %arg6[%c0_85, %c5] : memref<1x9xf32, #tpu.memory_space<smem>>
    %c0_86 = arith.constant 0 : index
    %c6 = arith.constant 6 : index
    %283 = memref.load %arg6[%c0_86, %c6] : memref<1x9xf32, #tpu.memory_space<smem>>
    memref.store %150, %arg6[%c0_86, %c6] : memref<1x9xf32, #tpu.memory_space<smem>>
    %c0_87 = arith.constant 0 : index
    %c7 = arith.constant 7 : index
    %284 = memref.load %arg6[%c0_87, %c7] : memref<1x9xf32, #tpu.memory_space<smem>>
    memref.store %260, %arg6[%c0_87, %c7] : memref<1x9xf32, #tpu.memory_space<smem>>
    %c0_88 = arith.constant 0 : index
    %c8 = arith.constant 8 : index
    %285 = memref.load %arg6[%c0_88, %c8] : memref<1x9xf32, #tpu.memory_space<smem>>
    memref.store %276, %arg6[%c0_88, %c8] : memref<1x9xf32, #tpu.memory_space<smem>>
    return
  }
}

</mosaic_0001>

<bundles_post_ra>
// kernel: tpu_custom_call.1
= control target key start
LH: loop header
LB: loop body
LE: loop exit
PB: predicated region body
PF: predicated region fallthrough
CT: control target
= control target key end

     0   :  { %v2097_v2 = vmov 0   ;;  %s3290_s0 = inlined_call_operand.vmem [shape: f32[4,512], index: 0, kind: input, shape index: {}]   ;;  %s3291_s1 = inlined_call_operand.vmem [shape: f32[4,512], index: 1, kind: input, shape index: {}]   ;;  %s3292_s2 = inlined_call_operand.vmem [shape: f32[4,128], index: 2, kind: input, shape index: {}]   ;;  %s3293_s3 = inlined_call_operand.vmem [shape: f32[4,128], index: 3, kind: input, shape index: {}]   ;;  %s3294_s4 = inlined_call_operand.vmem [shape: s32[2,128], index: 4, kind: input, shape index: {}]   ;;  %s3295_s5 = inlined_call_operand.vmem [shape: s32[128,2], index: 5, kind: input, shape index: {}]   ;;  %s3296_s6 = inlined_call_operand.hbm [shape: f32[1,9], index: 6, kind: output, shape index: {}]  }
   0x1   :  { %v331_v0 = vld [vmem:[%s3295_s5 + $0x10] sm:$0xff]  ;;  %v329_v1 = vld [vmem:[%s3295_s5] sm:$0xff]  ;;  %1964 = vset.pattern.permute.xlu1 %v2097_v2  ;;  %1963 = vset.pattern.permute.xlu0 %v2097_v2  ;;  %v332_v3 = vld [vmem:[%s3295_s5 + $0x18] sm:$0xff] }
   0x2   :  { %397 = vperm.xlu1 %1964, %v331_v0   ;;  %391 = vperm.xlu0 %1963, %v329_v1   ;;  %v330_v4 = vld [vmem:[%s3295_s5 + $0x8] sm:$0xff] }
   0x3   :  { %11 = vsyncpa [#allocation3], 0  ;;  %v334_v5 = vld [vmem:[%s3295_s5 + $0x28] sm:$0xff]  ;;  %v333_v6 = vld [vmem:[%s3295_s5 + $0x20] sm:$0xff]  ;;  %v51_v15 = vlaneseq  ;;  %v2098_v21 = vmov 1   ;;  %v3331_v25 = vmov 0.0  }
   0x4   :  { %v336_v7 = vld [vmem:[%s3295_s5 + $0x38] sm:$0xff]  ;;  %v335_v8 = vld [vmem:[%s3295_s5 + $0x30] sm:$0xff]  ;;  %v338_v9 = vld [vmem:[%s3295_s5 + $0x48] sm:$0xff]  ;;  %v2099_v24 = vmov 1.0|1.0   ;;  %s2101_s12 = smov 95  }
   0x5   :  { %v337_v10 = vld [vmem:[%s3295_s5 + $0x40] sm:$0xff]  ;;  %v340_v11 = vld [vmem:[%s3295_s5 + $0x58] sm:$0xff]  ;;  %v339_v12 = vld [vmem:[%s3295_s5 + $0x50] sm:$0xff]  ;;  %v2192_v18 = vshrl.u32 %v51_v15, 7  ;;  %v2231_v28 = vand.u32 127, %v51_v15  ;;  %s2104_s15 = smov 119  }
   0x6   :  { %400 = vperm.xlu1 %1964, %v332_v3   ;;  %394 = vperm.xlu0 %1963, %v330_v4   ;;  %v342_v13 = vld [vmem:[%s3295_s5 + $0x68] sm:$0xff]  ;;  %v341_v14 = vld [vmem:[%s3295_s5 + $0x60] sm:$0xff]  ;;  %v344_v16 = vld [vmem:[%s3295_s5 + $0x78] sm:$0xff]  ;;  %s2105_s16 = smov 63   ;;  %s2107_s17 = smov 103  }
   0x7   :  { %v343_v17 = vld [vmem:[%s3295_s5 + $0x70] sm:$0xff]  ;;  %v380_v19 = vsub.s32 0, %v2192_v18  ;;  %v2198_v20 = vld [vmem:[%s3294_s4] sm:$0x3]  ;;  %v2204_v23 = vadd.s32 8, %v2192_v18  ;;  %v886_v56 = vsub.s32 1, %v2192_v18 }
   0x8   :  { %v2410_v62 = vadd.s32 16, %v2192_v18  ;;  %v2422_v63 = vadd.s32 24, %v2192_v18 }
   0x9   :  { %v2201_v22 = vrot.slane %v2198_v20, %v380_v19  ;;  %3342 = vst [vmem:[#allocation5_spill] sm:$0xff] %v2204_v23 }
   0xa   :  { %406 = vperm.xlu1 %1964, %v334_v5   ;;  %403 = vperm.xlu0 %1963, %v333_v6   ;;  %3349 = vst [vmem:[#allocation6_spill] sm:$0xff] %v2410_v62  ;;  %3350 = vst [vmem:[#allocation7_spill] sm:$0xff] %v2422_v63 }
   0xb   :  { %vm382_vm0 = vcmp.eq.s32.totalorder %v2192_v18, %v2201_v22  ;;  %vm383_vm1 = vcmp.eq.s32.totalorder %v2204_v23, %v2201_v22 }
   0xc   :  { %vm1571_vm2 = vmpackc.low %vm383_vm1, %vm382_vm0  ;;  %v2221_v26 = vsel %vm382_vm0, 1.0, %v3331_v25  ;;  %v2228_v27 = vsel %vm383_vm1, 1.0, %v3331_v25 }
   0xd   :  { %1747 = vmatprep.mubr.msk.bf16.mxu0 %vm1571_vm2, %v2099_v24 }
   0xe   :  { %412 = vperm.xlu1 %1964, %v336_v7   ;;  %409 = vperm.xlu0 %1963, %v335_v8  }
  0x12   :  { %418 = vperm.xlu1 %1964, %v338_v9   ;;  %415 = vperm.xlu0 %1963, %v337_v10  }
  0x16   :  { %424 = vperm.xlu1 %1964, %v340_v11   ;;  %421 = vperm.xlu0 %1963, %v339_v12  }
  0x1a   :  { %430 = vperm.xlu1 %1964, %v342_v13   ;;  %427 = vperm.xlu0 %1963, %v341_v14  }
  0x1e   :  { %436 = vperm.xlu1 %1964, %v344_v16   ;;  %433 = vperm.xlu0 %1963, %v343_v17  }
  0x22   :  { %1966 = vset.pattern.permute.xlu1 %v2098_v21  ;;  %1965 = vset.pattern.permute.xlu0 %v2098_v21 }
  0x23   :  { %900 = vperm.xlu1 %1966, %v330_v4   ;;  %897 = vperm.xlu0 %1965, %v329_v1  }
  0x27   :  { %903 = vperm.xlu1 %1966, %v331_v0   ;;  %906 = vperm.xlu0 %1965, %v332_v3   ;;  %v2425_v0 = vrot.slane %v2198_v20, %v886_v56 }
  0x2b   :  { %909 = vperm.xlu1 %1966, %v333_v6   ;;  %912 = vperm.xlu0 %1965, %v334_v5  }
  0x2f   :  { %915 = vperm.xlu1 %1966, %v335_v8   ;;  %918 = vperm.xlu0 %1965, %v336_v7   ;;  %v2457_v7 = vadd.s32 40, %v2192_v18  ;;  %v2460_v8 = vadd.s32 32, %v2192_v18 }
  0x31   :  { %3353 = vst [vmem:[#allocation8_spill] sm:$0xff] %v2457_v7  ;;  %3354 = vst [vmem:[#allocation9_spill] sm:$0xff] %v2460_v8 }
  0x33   :  { %921 = vperm.xlu1 %1966, %v337_v10   ;;  %924 = vperm.xlu0 %1965, %v338_v9  }
  0x37   :  { %927 = vperm.xlu1 %1966, %v339_v12   ;;  %930 = vperm.xlu0 %1965, %v340_v11  }
  0x3b   :  { %933 = vperm.xlu1 %1966, %v341_v14   ;;  %936 = vperm.xlu0 %1965, %v342_v13  }
  0x3f   :  { %939 = vperm.xlu1 %1966, %v343_v17   ;;  %942 = vperm.xlu0 %1965, %v344_v16   ;;  %v2529_v16 = vadd.s32 48, %v2192_v18  ;;  %v2532_v17 = vadd.s32 56, %v2192_v18 }
  0x41   :  { %3359 = vst [vmem:[#allocation10_spill] sm:$0xff] %v2529_v16  ;;  %3360 = vst [vmem:[#allocation11_spill] sm:$0xff] %v2532_v17 }
  0x5e   :  { %514 = vadd.xlane.f32.xlu0 %v2221_v26 }
  0x63   :  { %516 = vadd.xlane.f32.xlu1 %v2228_v27 }
  0x81   :  { %v2233_v29 = vpop.permute.xlu1 %397  ;;  %v2235_v30 = vpop.permute.xlu0 %391 }
  0x82   :  { %vm611_vm3 = vcmp.eq.s32.totalorder %v2201_v22, %v2235_v30  ;;  %vm3316_vm4 = vcmp.eq.s32.totalorder %v2231_v28, %v2233_v29  ;;  %vm3318_vm5 = vcmp.eq.s32.totalorder %v2231_v28, %v2235_v30  ;;  %vm613_vm11 = vcmp.eq.s32.totalorder %v2201_v22, %v2233_v29 }
  0x83   :  { %v1579_v31 = vsel %vm611_vm3, 1.0, %v3331_v25  ;;  %v1581_v38 = vsel %vm613_vm11, 1.0, %v3331_v25 }
  0x84   :  { %659 = vadd.xlane.f32.xlu1 %v1579_v31 }
  0x85   :  { %v2242_v32 = vpop.permute.xlu1 %400  ;;  %v2244_v33 = vpop.permute.xlu0 %394 }
  0x86   :  { %vm3315_vm6 = vcmp.eq.s32.totalorder %v2231_v28, %v2242_v32  ;;  %vm3317_vm7 = vcmp.eq.s32.totalorder %v2231_v28, %v2244_v33  ;;  %vm612_vm8 = vcmp.eq.s32.totalorder %v2201_v22, %v2244_v33  ;;  %vm614_vm9 = vcmp.eq.s32.totalorder %v2201_v22, %v2242_v32 }
  0x87   :  { %vm1555_vm10 = vmpackc.low %vm3317_vm7, %vm3318_vm5  ;;  %v1580_v34 = vsel %vm612_vm8, 1.0, %v3331_v25  ;;  %v1582_v35 = vsel %vm614_vm9, 1.0, %v3331_v25 }
  0x88   :  { %1731 = vmatprep.subr.msk.bf16.mxu0 %vm1555_vm10, %v2099_v24  ;;  %661 = vadd.xlane.f32.xlu0 %v1580_v34  ;;  %vm1557_vm12 = vmpackc.low %vm3315_vm6, %vm3316_vm4 }
  0x89   :  { %665 = vadd.xlane.f32.xlu1 %v1582_v35  ;;  %v2267_v36 = vpop.permute.xlu1 %406  ;;  %v2269_v37 = vpop.permute.xlu0 %403  ;;  %1732 = vmatpush3.bf16.msk.msra.mxu0 %vm1555_vm10, %v2099_v24 }
  0x8a   :  { %vm3310_vm13 = vcmp.eq.s32.totalorder %v2231_v28, %v2267_v36  ;;  %vm3309_vm14 = vcmp.eq.s32.totalorder %v2231_v28, %v2269_v37  ;;  %1733 = vmatprep.subr.msk.bf16.mxu0 %vm1557_vm12, %v2099_v24  ;;  %vm616_vm15 = vcmp.eq.s32.totalorder %v2201_v22, %v2267_v36  ;;  %vm615_vm0 = vcmp.eq.s32.totalorder %v2201_v22, %v2269_v37 }
  0x8b   :  { %v1584_v39 = vsel %vm616_vm15, 1.0, %v3331_v25  ;;  %vm1559_vm1 = vmpackc.low %vm3310_vm13, %vm3309_vm14  ;;  %v1583_v42 = vsel %vm615_vm0, 1.0, %v3331_v25 }
  0x8c   :  { %663 = vadd.xlane.f32.xlu0 %v1581_v38 }
  0x8d   :  { %669 = vadd.xlane.f32.xlu1 %v1584_v39  ;;  %v2289_v40 = vpop.permute.xlu1 %412  ;;  %v2291_v41 = vpop.permute.xlu0 %409  ;;  %1734 = vmatpush3.bf16.msk.msra.mxu0 %vm1557_vm12, %v2099_v24 }
  0x8e   :  { %vm3308_vm2 = vcmp.eq.s32.totalorder %v2231_v28, %v2289_v40  ;;  %vm3307_vm3 = vcmp.eq.s32.totalorder %v2231_v28, %v2291_v41  ;;  %1735 = vmatprep.subr.msk.bf16.mxu0 %vm1559_vm1, %v2099_v24  ;;  %vm618_vm8 = vcmp.eq.s32.totalorder %v2201_v22, %v2289_v40  ;;  %vm617_vm9 = vcmp.eq.s32.totalorder %v2201_v22, %v2291_v41 }
  0x8f   :  { %v1586_v43 = vsel %vm618_vm8, 1.0, %v3331_v25  ;;  %vm1561_vm10 = vmpackc.low %vm3308_vm2, %vm3307_vm3  ;;  %v1585_v46 = vsel %vm617_vm9, 1.0, %v3331_v25 }
  0x90   :  { %667 = vadd.xlane.f32.xlu0 %v1583_v42 }
  0x91   :  { %673 = vadd.xlane.f32.xlu1 %v1586_v43  ;;  %v2311_v44 = vpop.permute.xlu1 %418  ;;  %v2313_v45 = vpop.permute.xlu0 %415  ;;  %1736 = vmatpush3.bf16.msk.msra.mxu0 %vm1559_vm1, %v2099_v24 }
  0x92   :  { %vm3304_vm11 = vcmp.eq.s32.totalorder %v2231_v28, %v2311_v44  ;;  %vm3297_vm12 = vcmp.eq.s32.totalorder %v2231_v28, %v2313_v45  ;;  %1737 = vmatprep.subr.msk.bf16.mxu0 %vm1561_vm10, %v2099_v24  ;;  %vm620_vm15 = vcmp.eq.s32.totalorder %v2201_v22, %v2311_v44  ;;  %vm619_vm0 = vcmp.eq.s32.totalorder %v2201_v22, %v2313_v45 }
  0x93   :  { %v1588_v47 = vsel %vm620_vm15, 1.0, %v3331_v25  ;;  %vm2339_vm1 = vmpackc.low %vm3304_vm11, %vm3297_vm12  ;;  %v1587_v51 = vsel %vm619_vm0, 1.0, %v3331_v25 }
  0x94   :  { %671 = vadd.xlane.f32.xlu0 %v1585_v46 }
  0x95   :  { %677 = vadd.xlane.f32.xlu1 %v1588_v47  ;;  %v2343_v49 = vpop.permute.xlu1 %424  ;;  %v2345_v50 = vpop.permute.xlu0 %421  ;;  %1738 = vmatpush3.bf16.msk.msra.mxu0 %vm1561_vm10, %v2099_v24 }
  0x96   :  { %vm3299_vm8 = vcmp.eq.s32.totalorder %v2231_v28, %v2343_v49  ;;  %vm3298_vm9 = vcmp.eq.s32.totalorder %v2231_v28, %v2345_v50  ;;  %1739 = vmatprep.subr.msk.bf16.mxu0 %vm2339_vm1, %v2099_v24  ;;  %vm622_vm15 = vcmp.eq.s32.totalorder %v2201_v22, %v2343_v49  ;;  %vm621_vm10 = vcmp.eq.s32.totalorder %v2201_v22, %v2345_v50 }
  0x97   :  { %v1590_v52 = vsel %vm622_vm15, 1.0, %v3331_v25  ;;  %vm2367_vm12 = vmpackc.low %vm3299_vm8, %vm3298_vm9  ;;  %v1589_v57 = vsel %vm621_vm10, 1.0, %v3331_v25 }
  0x98   :  { %675 = vadd.xlane.f32.xlu0 %v1587_v51  ;;  %v2820_v51 = vld [vmem:[%s3290_s0] sm:$0xff] }
  0x99   :  { %681 = vadd.xlane.f32.xlu1 %v1590_v52  ;;  %v2371_v54 = vpop.permute.xlu1 %430  ;;  %v2373_v55 = vpop.permute.xlu0 %427  ;;  %1740 = vmatpush3.bf16.msk.msra.mxu0 %vm2339_vm1, %v2099_v24 }
  0x9a   :  { %vm3301_vm0 = vcmp.eq.s32.totalorder %v2231_v28, %v2371_v54  ;;  %vm3300_vm15 = vcmp.eq.s32.totalorder %v2231_v28, %v2373_v55  ;;  %1741 = vmatprep.subr.msk.bf16.mxu0 %vm2367_vm12, %v2099_v24  ;;  %vm624_vm9 = vcmp.eq.s32.totalorder %v2201_v22, %v2371_v54  ;;  %vm623_vm1 = vcmp.eq.s32.totalorder %v2201_v22, %v2373_v55 }
  0x9b   :  { %v1592_v58 = vsel %vm624_vm9, 1.0, %v3331_v25  ;;  %vm2398_vm8 = vmpackc.low %vm3301_vm0, %vm3300_vm15  ;;  %v1591_v1 = vsel %vm623_vm1, 1.0, %v3331_v25  ;;  %vm385_vm1 = vcmp.eq.s32.totalorder %v2422_v63, %v2201_v22 }
  0x9c   :  { %679 = vadd.xlane.f32.xlu0 %v1589_v57 }
  0x9d   :  { %685 = vadd.xlane.f32.xlu1 %v1592_v58  ;;  %v2402_v60 = vpop.permute.xlu1 %436  ;;  %v2404_v61 = vpop.permute.xlu0 %433  ;;  %1742 = vmatpush3.bf16.msk.msra.mxu0 %vm2367_vm12, %v2099_v24 }
  0x9e   :  { %vm3303_vm9 = vcmp.eq.s32.totalorder %v2231_v28, %v2402_v60  ;;  %vm3302_vm10 = vcmp.eq.s32.totalorder %v2231_v28, %v2404_v61  ;;  %1743 = vmatprep.subr.msk.bf16.mxu0 %vm2398_vm8, %v2099_v24  ;;  %vm626_vm15 = vcmp.eq.s32.totalorder %v2201_v22, %v2402_v60  ;;  %vm625_vm12 = vcmp.eq.s32.totalorder %v2201_v22, %v2404_v61 }
  0x9f   :  { %v1594_v2 = vsel %vm626_vm15, 1.0, %v3331_v25  ;;  %vm2437_vm0 = vmpackc.low %vm3303_vm9, %vm3302_vm10  ;;  %vm384_vm15 = vcmp.eq.s32.totalorder %v2410_v62, %v2201_v22  ;;  %v1593_v6 = vsel %vm625_vm12, 1.0, %v3331_v25 }
  0xa0   :  { %683 = vadd.xlane.f32.xlu0 %v1591_v1 }
  0xa1   :  { %689 = vadd.xlane.f32.xlu1 %v1594_v2  ;;  %1744 = vmatpush3.bf16.msk.msra.mxu0 %vm2398_vm8, %v2099_v24  ;;  %v2685_v2 = vsel %vm385_vm1, 1.0, %v3331_v25 }
  0xa2   :  { %v2446_v4 = vpop.permute.xlu1 %900  ;;  %v2448_v5 = vpop.permute.xlu0 %897  ;;  %1745 = vmatprep.subr.msk.bf16.mxu0 %vm2437_vm0, %v2099_v24 }
  0xa3   :  { %vm3306_vm8 = vcmp.eq.s32.totalorder %v2231_v28, %v2446_v4  ;;  %vm3305_vm10 = vcmp.eq.s32.totalorder %v2231_v28, %v2448_v5  ;;  %vm1118_vm9 = vcmp.eq.s32.totalorder %v2425_v0, %v2446_v4  ;;  %vm1117_vm12 = vcmp.eq.s32.totalorder %v2425_v0, %v2448_v5 }
  0xa4   :  { %vm2476_vm11 = vmpackc.low %vm3306_vm8, %vm3305_vm10  ;;  %687 = vadd.xlane.f32.xlu0 %v1593_v6  ;;  %v1644_v10 = vsel %vm1118_vm9, 1.0, %v3331_v25  ;;  %v1643_v11 = vsel %vm1117_vm12, 1.0, %v3331_v25  ;;  %vm386_vm9 = vcmp.eq.s32.totalorder %v2460_v8, %v2201_v22  ;;  %v2704_v6 = vsel %vm384_vm15, 1.0, %v3331_v25 }
  0xa5   :  { %1746 = vmatpush3.bf16.msk.msra.mxu0 %vm2437_vm0, %v2099_v24  ;;  %1167 = vadd.xlane.f32.xlu1 %v1644_v10  ;;  %vm1573_vm10 = vmpackc.low %vm385_vm1, %vm384_vm15  ;;  %vm387_vm0 = vcmp.eq.s32.totalorder %v2457_v7, %v2201_v22 }
  0xa6   :  { %v2491_v12 = vpop.permute.xlu1 %903  ;;  %v2493_v13 = vpop.permute.xlu0 %906  ;;  %1799 = vmatprep.subr.msk.bf16.mxu0 %vm2476_vm11, %v2099_v24  ;;  %vm1575_vm2 = vmpackc.low %vm387_vm0, %vm386_vm9  ;;  %v2733_v14 = vsel %vm387_vm0, 1.0, %v3331_v25 }
  0xa7   :  { %vm3312_vm12 = vcmp.eq.s32.totalorder %v2231_v28, %v2491_v12  ;;  %vm3311_vm8 = vcmp.eq.s32.totalorder %v2231_v28, %v2493_v13  ;;  %vm1120_vm3 = vcmp.eq.s32.totalorder %v2425_v0, %v2493_v13  ;;  %vm1119_vm13 = vcmp.eq.s32.totalorder %v2425_v0, %v2491_v12 }
  0xa8   :  { %vm2520_vm14 = vmpackc.low %vm3311_vm8, %vm3312_vm12  ;;  %1165 = vadd.xlane.f32.xlu0 %v1643_v11  ;;  %1748 = vmatmul.mubr.msk.bf16.vlgmr.msra.gmra.mrb[0].mxu0 %vm1573_vm10, %v2099_v24  ;;  %v1646_v15 = vsel %vm1120_vm3, 1.0, %v3331_v25  ;;  %v1645_v21 = vsel %vm1119_vm13, 1.0, %v3331_v25  ;;  %vm388_vm13 = vcmp.eq.s32.totalorder %v2529_v16, %v2201_v22  ;;  %vm389_vm12 = vcmp.eq.s32.totalorder %v2532_v17, %v2201_v22 }
  0xa9   :  { %1800 = vmatpush3.bf16.msk.msra.mxu0 %vm2476_vm11, %v2099_v24  ;;  %1171 = vadd.xlane.f32.xlu1 %v1646_v15  ;;  %v2787_v42 = vsel %vm388_vm13, 1.0, %v3331_v25 }
  0xaa   :  { %v2537_v19 = vpop.permute.xlu1 %909  ;;  %v2539_v20 = vpop.permute.xlu0 %912  ;;  %1801 = vmatprep.subr.msk.bf16.mxu0 %vm2520_vm14, %v2099_v24  ;;  %1751 = vmatprep.mubr.msk.bf16.mxu0 %vm1575_vm2, %v2099_v24 }
  0xab   :  { %vm3314_vm3 = vcmp.eq.s32.totalorder %v2231_v28, %v2537_v19  ;;  %vm3313_vm10 = vcmp.eq.s32.totalorder %v2231_v28, %v2539_v20  ;;  %vm1122_vm11 = vcmp.eq.s32.totalorder %v2425_v0, %v2539_v20  ;;  %vm1121_vm2 = vcmp.eq.s32.totalorder %v2425_v0, %v2537_v19 }
  0xac   :  { %vm2558_vm8 = vmpackc.low %vm3313_vm10, %vm3314_vm3  ;;  %1169 = vadd.xlane.f32.xlu0 %v1645_v21  ;;  %v1648_v34 = vsel %vm1122_vm11, 1.0, %v3331_v25  ;;  %vm888_vm10 = vcmp.eq.s32.totalorder %v2192_v18, %v2425_v0  ;;  %v1647_v39 = vsel %vm1121_vm2, 1.0, %v3331_v25  ;;  %v2746_v21 = vsel %vm386_vm9, 1.0, %v3331_v25 }
  0xad   :  { %1802 = vmatpush3.bf16.msk.msra.mxu0 %vm2520_vm14, %v2099_v24  ;;  %1175 = vadd.xlane.f32.xlu1 %v1648_v34  ;;  %vm1577_vm11 = vmpackc.low %vm389_vm12, %vm388_vm13  ;;  %vm889_vm14 = vcmp.eq.s32.totalorder %v2204_v23, %v2425_v0  ;;  %v2776_v34 = vsel %vm389_vm12, 1.0, %v3331_v25  ;;  %v2808_v22 = vsel %vm888_vm10, 1.0, %v3331_v25  ;;  %vm3377_vm13 = vcmp.eq.s32.totalorder %v2231_v28, %v2235_v30 }
  0xae   :  { %v2578_v35 = vpop.permute.xlu1 %915  ;;  %v2580_v38 = vpop.permute.xlu0 %918  ;;  %1803 = vmatprep.subr.msk.bf16.mxu0 %vm2558_vm8, %v2099_v24  ;;  %vm1635_vm7 = vmpackc.low %vm889_vm14, %vm888_vm10  ;;  %vm37_vm10 = vcmask 1043456  }
  0xaf   :  { %vm950_vm3 = vcmp.eq.s32.totalorder %v2231_v28, %v2578_v35  ;;  %vm3319_vm6 = vcmp.eq.s32.totalorder %v2231_v28, %v2580_v38  ;;  %vm1124_vm4 = vcmp.eq.s32.totalorder %v2425_v0, %v2580_v38  ;;  %vm1123_vm2 = vcmp.eq.s32.totalorder %v2425_v0, %v2578_v35 }
  0xb0   :  { %vm2608_vm5 = vmpackc.low %vm3319_vm6, %vm950_vm3  ;;  %1173 = vadd.xlane.f32.xlu0 %v1647_v39  ;;  %v1650_v43 = vsel %vm1124_vm4, 1.0, %v3331_v25  ;;  %1752 = vmatmul.mubr.msk.bf16.gmra.mrb[4].mxu0 %vm1577_vm11, %v2099_v24  ;;  %v1649_v48 = vsel %vm1123_vm2, 1.0, %v3331_v25 }
  0xb1   :  { %1804 = vmatpush3.bf16.msk.msra.mxu0 %vm2558_vm8, %v2099_v24  ;;  %1179 = vadd.xlane.f32.xlu1 %v1650_v43  ;;  %v2800_v43 = vsel %vm889_vm14, 1.0, %v3331_v25  ;;  %vm3378_vm14 = vcmp.eq.s32.totalorder %v2231_v28, %v2244_v33 }
  0xb2   :  { %v2619_v46 = vpop.permute.xlu1 %921  ;;  %v2621_v47 = vpop.permute.xlu0 %924  ;;  %1805 = vmatprep.subr.msk.bf16.mxu0 %vm2608_vm5, %v2099_v24  ;;  %1815 = vmatprep.mubr.msk.bf16.mxu0 %vm1635_vm7, %v2099_v24 }
  0xb3   :  { %vm3321_vm4 = vcmp.eq.s32.totalorder %v2231_v28, %v2619_v46  ;;  %vm3320_vm11 = vcmp.eq.s32.totalorder %v2231_v28, %v2621_v47  ;;  %vm1126_vm8 = vcmp.eq.s32.totalorder %v2425_v0, %v2621_v47  ;;  %vm1125_vm7 = vcmp.eq.s32.totalorder %v2425_v0, %v2619_v46 }
  0xb4   :  { %vm2640_vm6 = vmpackc.low %vm3320_vm11, %vm3321_vm4  ;;  %1177 = vadd.xlane.f32.xlu0 %v1649_v48  ;;  %v1652_v52 = vsel %vm1126_vm8, 1.0, %v3331_v25  ;;  %v1651_v57 = vsel %vm1125_vm7, 1.0, %v3331_v25 }
  0xb5   :  { %1806 = vmatpush3.bf16.msk.msra.mxu0 %vm2608_vm5, %v2099_v24  ;;  %1183 = vadd.xlane.f32.xlu1 %v1652_v52 }
  0xb6   :  { %v2650_v53 = vpop.permute.xlu1 %927  ;;  %v2652_v56 = vpop.permute.xlu0 %930  ;;  %1807 = vmatprep.subr.msk.bf16.mxu0 %vm2640_vm6, %v2099_v24 }
  0xb7   :  { %vm954_vm2 = vcmp.eq.s32.totalorder %v2231_v28, %v2650_v53  ;;  %vm955_vm8 = vcmp.eq.s32.totalorder %v2231_v28, %v2652_v56  ;;  %vm1128_vm5 = vcmp.eq.s32.totalorder %v2425_v0, %v2652_v56  ;;  %vm1127_vm4 = vcmp.eq.s32.totalorder %v2425_v0, %v2650_v53 }
  0xb8   :  { %vm1629_vm11 = vmpackc.low %vm955_vm8, %vm954_vm2  ;;  %1181 = vadd.xlane.f32.xlu0 %v1651_v57  ;;  %v1654_v58 = vsel %vm1128_vm5, 1.0, %v3331_v25  ;;  %v1653_v3 = vsel %vm1127_vm4, 1.0, %v3331_v25  ;;  %v33_v57 = vcombine.high %v2820_v51, %v2820_v51 }
  0xb9   :  { %1808 = vmatpush3.bf16.msk.msra.mxu0 %vm2640_vm6, %v2099_v24  ;;  %1187 = vadd.xlane.f32.xlu1 %v1654_v58 }
  0xba   :  { %v2676_v59 = vpop.permute.xlu1 %933  ;;  %v2678_v1 = vpop.permute.xlu0 %936  ;;  %1809 = vmatprep.subr.msk.bf16.mxu0 %vm1629_vm11, %v2099_v24 }
  0xbb   :  { %vm3325_vm7 = vcmp.eq.s32.totalorder %v2231_v28, %v2676_v59  ;;  %vm3322_vm5 = vcmp.eq.s32.totalorder %v2231_v28, %v2678_v1  ;;  %vm1130_vm1 = vcmp.eq.s32.totalorder %v2425_v0, %v2678_v1 }
  0xbc   :  { %vm1631_vm6 = vmpackc.low %vm3322_vm5, %vm3325_vm7  ;;  %1185 = vadd.xlane.f32.xlu0 %v1653_v3  ;;  %v1656_v11 = vsel %vm1130_vm1, 1.0, %v3331_v25  ;;  %vm1129_vm5 = vcmp.eq.s32.totalorder %v2425_v0, %v2676_v59  ;;  %vm890_vm1 = vcmp.eq.s32.totalorder %v2410_v62, %v2425_v0  ;;  %vm895_vm7 = vcmp.eq.s32.totalorder %v2532_v17, %v2425_v0  ;;  %v2877_v17 = vld [vmem:[%s3292_s2] sm:$0xf] }
  0xbd   :  { %1810 = vmatpush3.bf16.msk.msra.mxu0 %vm1629_vm11, %v2099_v24  ;;  %520 = vadd.xlane.f32.xlu1 %v2685_v2  ;;  %v1655_v15 = vsel %vm1129_vm5, 1.0, %v3331_v25  ;;  %v2832_v52 = vsel %vm890_vm1, 1.0, %v3331_v25  ;;  %v2863_v62 = vsel %vm895_vm7, 1.0, %v3331_v25 }
  0xbe   :  { %v2708_v9 = vpop.permute.xlu1 %939  ;;  %v2710_v10 = vpop.permute.xlu0 %942  ;;  %1811 = vmatprep.subr.msk.bf16.mxu0 %vm1631_vm6, %v2099_v24  ;;  %3367 = vst [vmem:[#allocation12_spill] sm:$0xff] %v2832_v52  ;;  %3370 = vst [vmem:[#allocation15_spill] sm:$0xff] %v2863_v62 }
  0xbf   :  { %vm3324_vm4 = vcmp.eq.s32.totalorder %v2231_v28, %v2708_v9  ;;  %vm3323_vm11 = vcmp.eq.s32.totalorder %v2231_v28, %v2710_v10  ;;  %vm1132_vm0 = vcmp.eq.s32.totalorder %v2425_v0, %v2710_v10 }
  0xc0   :  { %vm1633_vm15 = vmpackc.low %vm3323_vm11, %vm3324_vm4  ;;  %518 = vadd.xlane.f32.xlu0 %v2704_v6  ;;  %vm891_vm11 = vcmp.eq.s32.totalorder %v2422_v63, %v2425_v0  ;;  %v1658_v31 = vsel %vm1132_vm0, 1.0, %v3331_v25  ;;  %vm1131_vm4 = vcmp.eq.s32.totalorder %v2425_v0, %v2708_v9  ;;  %vm894_vm0 = vcmp.eq.s32.totalorder %v2529_v16, %v2425_v0 }
  0xc1   :  { %1812 = vmatpush3.bf16.msk.msra.mxu0 %vm1631_vm6, %v2099_v24  ;;  %1191 = vadd.xlane.f32.xlu1 %v1656_v11  ;;  %vm1637_vm5 = vmpackc.low %vm891_vm11, %vm890_vm1  ;;  %vm892_vm6 = vcmp.eq.s32.totalorder %v2460_v8, %v2425_v0  ;;  %v1657_v39 = vsel %vm1131_vm4, 1.0, %v3331_v25  ;;  %v2815_v48 = vsel %vm891_vm11, 1.0, %v3331_v25  ;;  %vm3380_vm4 = vcmp.eq.s32.totalorder %v2231_v28, %v2242_v32 }
  0xc2   :  { %1813 = vmatprep.subr.msk.bf16.mxu0 %vm1633_vm15, %v2099_v24  ;;  %vm1641_vm12 = vmpackc.low %vm895_vm7, %vm894_vm0  ;;  %v2850_v11 = vsel %vm892_vm6, 1.0, %v3331_v25  ;;  %vm3379_vm7 = vcmp.eq.s32.totalorder %v2231_v28, %v2233_v29  ;;  %vm3381_vm11 = vcmp.eq.s32.totalorder %v2231_v28, %v2267_v36  ;;  %vm3382_vm1 = vcmp.eq.s32.totalorder %v2231_v28, %v2269_v37 }
  0xc3   :  { %3369 = vst [vmem:[#allocation14_spill] sm:$0xff] %v2850_v11 }
  0xc4   :  { %1189 = vadd.xlane.f32.xlu0 %v1655_v15  ;;  %v38_v15 = vsel %vm37_vm10, %v2820_v51, -inf }
  0xc5   :  { %1814 = vmatpush3.bf16.msk.msra.mxu0 %vm1633_vm15, %v2099_v24  ;;  %524 = vadd.xlane.f32.xlu1 %v2733_v14  ;;  %vm893_vm15 = vcmp.eq.s32.totalorder %v2457_v7, %v2425_v0  ;;  %v2884_v0 = vld [vmem:[%s3293_s3] sm:$0xf] }
  0xc6   :  { %vm1639_vm9 = vmpackc.low %vm893_vm15, %vm892_vm6  ;;  %v2843_v3 = vsel %vm893_vm15, 1.0, %v3331_v25  ;;  %3372 = vst [vmem:[#allocation17_spill] sm:$0xff] %v2884_v0  ;;  %vm3384_vm6 = vcmp.eq.s32.totalorder %v2231_v28, %v2291_v41  ;;  %vm3385_vm15 = vcmp.eq.s32.totalorder %v2231_v28, %v2311_v44 }
  0xc7   :  { %3368 = vst [vmem:[#allocation13_spill] sm:$0xff] %v2843_v3 }
  0xc8   :  { %522 = vadd.xlane.f32.xlu0 %v2746_v21  ;;  %1816 = vmatmul.mubr.msk.bf16.vlgmr.msra.gmra.mrb[8].mxu0 %vm1637_vm5, %v2099_v24  ;;  %vm3383_vm5 = vcmp.eq.s32.totalorder %v2231_v28, %v2289_v40 }
  0xc9   :  { %1195 = vadd.xlane.f32.xlu1 %v1658_v31  ;;  %1819 = vmatprep.mubr.msk.bf16.mxu0 %vm1639_vm9, %v2099_v24  ;;  %v39_v31 = vsel %vm37_vm10, %v33_v57, -inf  ;;  %v2870_v57 = vsel %vm894_vm0, 1.0, %v3331_v25  ;;  %vm3386_vm9 = vcmp.eq.s32.totalorder %v2231_v28, %v2313_v45  ;;  %vm3387_vm0 = vcmp.eq.s32.totalorder %v2231_v28, %v2343_v49 }
  0xca   :  { %v42_v8 = vmax.f32 %v38_v15, %v39_v31  ;;  %3371 = vst [vmem:[#allocation16_spill] sm:$0xff] %v2870_v57 }
  0xcc   :  { %1193 = vadd.xlane.f32.xlu0 %v1657_v39 }
  0xcd   :  { %528 = vadd.xlane.f32.xlu1 %v2776_v34 }
  0xd0   :  { %526 = vadd.xlane.f32.xlu0 %v2787_v42  ;;  %1820 = vmatmul.mubr.msk.bf16.gmra.mrb[12].mxu0 %vm1641_vm12, %v2099_v24  ;;  %v2825_v24 = vld [vmem:[%s3290_s0 + $0x8] sm:$0xff]  ;;  %vm3388_vm12 = vcmp.eq.s32.totalorder %v2231_v28, %v2345_v50 }
  0xd1   :  { %1022 = vadd.xlane.f32.xlu1 %v2800_v43  ;;  %v34_v58 = vcombine.high %v2825_v24, %v2825_v24  ;;  %v40_v39 = vsel %vm37_vm10, %v2825_v24, -inf }
  0xd3   :  { %v41_v7 = vsel %vm37_vm10, %v34_v58, -inf }
  0xd4   :  { %1020 = vadd.xlane.f32.xlu0 %v2808_v22  ;;  %v43_v63 = vmax.f32 %v40_v39, %v41_v7  ;;  %v229_v7 = vmul.f32 %v2877_v17, %v2877_v17 }
  0xd5   :  { %1026 = vadd.xlane.f32.xlu1 %v2815_v48 }
  0xd6   :  { %v44_v58 = vmax.f32 %v42_v8, %v43_v63  ;;  %v2889_v63 = vmul.f32 %v2884_v0, %v2877_v17 }
  0xd8   :  { %1024 = vadd.xlane.f32.xlu0 %v2832_v52  ;;  %3373 = vst [vmem:[#allocation18_spill] sm:$0xff] %v2889_v63 }
  0xd9   :  { %1030 = vadd.xlane.f32.xlu1 %v2843_v3 }
  0xdc   :  { %1028 = vadd.xlane.f32.xlu0 %v2850_v11 }
  0xdd   :  { %1034 = vadd.xlane.f32.xlu1 %v2863_v62 }
  0xe0   :  { %1032 = vadd.xlane.f32.xlu0 %v2870_v57 }
  0xe4   :  { %45 = vmax.xlane.f32.xlu0 %v44_v58  ;;  %v244_v58 = vmul.f32 %v2884_v0, %v2884_v0 }
  0xeb   :  { %v515_v15 = vpop.xlane.xlu0 %514 }
  0xec   :  { %v595_v31 = vadd.f32 1e-08, %v515_v15 }
  0xee   :  { %1971 = vrsqrt.f32 %v595_v31  ;;  %231 = vrot.lane.b32.xlu1 %v229_v7, %s2101_s12 }
  0xf0   :  { %v517_v8 = vpop.xlane.xlu1 %516 }
  0xf1   :  { %v596_v39 = vadd.f32 1e-08, %v517_v8 }
  0xf2   :  { %263 = vrot.lane.b32.xlu1 %v2889_v63, %s2101_s12 }
  0xf3   :  { %1973 = vrsqrt.f32 %v596_v39 }
  0xf8   :  { %v1972_v25 = vpop.eup %1971 }
  0xf9   :  { %v852_v16 = vmul.f32 %v1972_v25, %v515_v15  ;;  %v723_v31 = vmul.f32 %v1972_v25, %v2221_v26 }
  0xfa   :  { %246 = vrot.lane.b32.xlu0 %v244_v58, %s2101_s12 }
  0xfb   :  { %v2897_v7 = vmul.f32 %v1972_v25, %v852_v16  ;;  %1787 = vmatprep.mubr.f32.mxu1 %v723_v31 }
  0xfd   :  { %3374 = vst [vmem:[#allocation19_spill] sm:$0xff] %v2897_v7  ;;  %v2899_v23 = vpop.eup %1973 }
  0xfe   :  { %v853_v57 = vmul.f32 %v2899_v23, %v517_v8 }
 0x100   :  { %v2903_v62 = vmul.f32 %v2899_v23, %v853_v57 }
 0x102   :  { %3375 = vst [vmem:[#allocation20_spill] sm:$0xff] %v2903_v62 }
 0x111   :  { %v660_v39 = vpop.xlane.xlu1 %659 }
 0x112   :  { %v691_v63 = vadd.f32 1e-08, %v660_v39 }
 0x114   :  { %1975 = vrsqrt.f32 %v691_v63  ;;  %v3376_v63 = vmov 0.0  }
 0x115   :  { %v662_v11 = vpop.xlane.xlu0 %661  ;;  %v1541_v30 = vsel %vm3379_vm7, 1.0, %v3376_v63  ;;  %v1542_v33 = vsel %vm3380_vm4, 1.0, %v3376_v63  ;;  %v1544_v29 = vsel %vm3381_vm11, 1.0, %v3376_v63  ;;  %v1543_v32 = vsel %vm3382_vm1, 1.0, %v3376_v63 }
 0x116   :  { %v692_v0 = vadd.f32 1e-08, %v662_v11  ;;  %v666_v15 = vpop.xlane.xlu1 %665  ;;  %v1539_v11 = vsel %vm3377_vm13, 1.0, %v3376_v63  ;;  %v1546_v36 = vsel %vm3383_vm5, 1.0, %v3376_v63  ;;  %v1545_v37 = vsel %vm3384_vm6, 1.0, %v3376_v63 }
 0x117   :  { %v694_v3 = vadd.f32 1e-08, %v666_v15  ;;  %v1548_v40 = vsel %vm3385_vm15, 1.0, %v3376_v63  ;;  %v1547_v41 = vsel %vm3386_vm9, 1.0, %v3376_v63  ;;  %v1550_v44 = vsel %vm3387_vm0, 1.0, %v3376_v63 }
 0x118   :  { %1977 = vrsqrt.f32 %v692_v0  ;;  %v1549_v45 = vsel %vm3388_vm12, 1.0, %v3376_v63  ;;  %vm3389_vm13 = vcmp.eq.s32.totalorder %v2231_v28, %v2371_v54  ;;  %vm3391_vm7 = vcmp.eq.s32.totalorder %v2231_v28, %v2402_v60 }
 0x119   :  { %v664_v26 = vpop.xlane.xlu0 %663  ;;  %1979 = vrsqrt.f32 %v694_v3  ;;  %v1540_v3 = vsel %vm3378_vm14, 1.0, %v3376_v63  ;;  %v1552_v49 = vsel %vm3389_vm13, 1.0, %v3376_v63  ;;  %vm3390_vm14 = vcmp.eq.s32.totalorder %v2231_v28, %v2373_v55 }
 0x11a   :  { %v693_v25 = vadd.f32 1e-08, %v664_v26  ;;  %v670_v16 = vpop.xlane.xlu1 %669  ;;  %v1551_v50 = vsel %vm3390_vm14, 1.0, %v3376_v63  ;;  %v1554_v54 = vsel %vm3391_vm7, 1.0, %v3376_v63  ;;  %vm3392_vm4 = vcmp.eq.s32.totalorder %v2231_v28, %v2404_v61 }
 0x11b   :  { %v696_v58 = vadd.f32 1e-08, %v670_v16  ;;  %v1553_v55 = vsel %vm3392_vm4, 1.0, %v3376_v63  ;;  %vm3393_vm11 = vcmp.eq.s32.totalorder %v2231_v28, %v2446_v4  ;;  %vm3394_vm1 = vcmp.eq.s32.totalorder %v2231_v28, %v2448_v5 }
 0x11c   :  { %1981 = vrsqrt.f32 %v693_v25  ;;  %v1604_v60 = vsel %vm3393_vm11, 1.0, %v3376_v63  ;;  %v1603_v61 = vsel %vm3394_vm1, 1.0, %v3376_v63  ;;  %vm3395_vm5 = vcmp.eq.s32.totalorder %v2231_v28, %v2491_v12 }
 0x11d   :  { %v668_v31 = vpop.xlane.xlu0 %667  ;;  %1983 = vrsqrt.f32 %v696_v58  ;;  %v1605_v5 = vsel %vm3395_vm5, 1.0, %v3376_v63  ;;  %vm3396_vm6 = vcmp.eq.s32.totalorder %v2231_v28, %v2493_v13  ;;  %vm3397_vm15 = vcmp.eq.s32.totalorder %v2231_v28, %v2537_v19 }
 0x11e   :  { %v695_v8 = vadd.f32 1e-08, %v668_v31  ;;  %v674_v7 = vpop.xlane.xlu1 %673  ;;  %v1976_v62 = vpop.eup %1975  ;;  %v1607_v13 = vsel %vm3397_vm15, 1.0, %v3376_v63  ;;  %vm3398_vm9 = vcmp.eq.s32.totalorder %v2231_v28, %v2539_v20  ;;  %v1609_v20 = vsel %vm950_vm3, 1.0, %v3376_v63 }
 0x11f   :  { %v698_v57 = vadd.f32 1e-08, %v674_v7  ;;  %v731_v25 = vmul.f32 %v1976_v62, %v1539_v11  ;;  %vm3399_vm0 = vcmp.eq.s32.totalorder %v2231_v28, %v2580_v38  ;;  %vm3400_vm3 = vcmp.eq.s32.totalorder %v2231_v28, %v2619_v46 }
 0x120   :  { %1985 = vrsqrt.f32 %v695_v8  ;;  %v1611_v38 = vsel %vm3400_vm3, 1.0, %v3376_v63  ;;  %vm3401_vm12 = vcmp.eq.s32.totalorder %v2231_v28, %v2621_v47  ;;  %v1613_v47 = vsel %vm954_vm2, 1.0, %v3376_v63 }
 0x121   :  { %v672_v39 = vpop.xlane.xlu0 %671  ;;  %1987 = vrsqrt.f32 %v698_v57  ;;  %vm3402_vm2 = vcmp.eq.s32.totalorder %v2231_v28, %v2676_v59  ;;  %vm3404_vm13 = vcmp.eq.s32.totalorder %v2231_v28, %v2708_v9  ;;  %vm3405_vm14 = vcmp.eq.s32.totalorder %v2231_v28, %v2710_v10 }
 0x122   :  { %v1978_v52 = vpop.eup %1977  ;;  %v697_v0 = vadd.f32 1e-08, %v672_v39  ;;  %v678_v15 = vpop.xlane.xlu1 %677  ;;  %vm215_vm7 = vcmask 257024   ;;  %vm1414_vm1 = vcmask 523264   ;;  %vm354_vm3 = vcmp.eq.s32.totalorder %v2192_v18, %v2231_v28 }
 0x123   :  { %v700_v26 = vadd.f32 1e-08, %v678_v15  ;;  %v732_v7 = vmul.f32 %v1978_v52, %v1540_v3  ;;  %v1980_v16 = vpop.eup %1979 }
 0x124   :  { %1989 = vrsqrt.f32 %v697_v0  ;;  %v734_v11 = vmul.f32 %v1980_v16, %v1542_v33 }
 0x125   :  { %v676_v58 = vpop.xlane.xlu0 %675  ;;  %v1867_v31 = vpack.c.bf16 %v732_v7, %v731_v25  ;;  %1991 = vrsqrt.f32 %v700_v26 }
 0x126   :  { %v1982_v8 = vpop.eup %1981  ;;  %v699_v57 = vadd.f32 1e-08, %v676_v58  ;;  %v682_v39 = vpop.xlane.xlu1 %681 }
 0x127   :  { %v702_v62 = vadd.f32 1e-08, %v682_v39  ;;  %1868 = vmatprep.subr.bf16.mxu1 %v1867_v31  ;;  %v733_v52 = vmul.f32 %v1982_v8, %v1541_v30  ;;  %v1984_v3 = vpop.eup %1983 }
 0x128   :  { %1993 = vrsqrt.f32 %v699_v57  ;;  %1870 = vmatpush3.bf16.msra.mxu1 %v1867_v31  ;;  %v736_v31 = vmul.f32 %v1984_v3, %v1544_v29 }
 0x129   :  { %v680_v0 = vpop.xlane.xlu0 %679  ;;  %v1871_v15 = vpack.c.bf16 %v734_v11, %v733_v52  ;;  %1995 = vrsqrt.f32 %v702_v62 }
 0x12a   :  { %v1986_v25 = vpop.eup %1985  ;;  %v701_v26 = vadd.f32 1e-08, %v680_v0  ;;  %v686_v7 = vpop.xlane.xlu1 %685 }
 0x12b   :  { %v704_v16 = vadd.f32 1e-08, %v686_v7  ;;  %1872 = vmatprep.subr.bf16.mxu1 %v1871_v15  ;;  %v735_v58 = vmul.f32 %v1986_v25, %v1543_v32  ;;  %v1988_v8 = vpop.eup %1987 }
 0x12c   :  { %1997 = vrsqrt.f32 %v701_v26  ;;  %1874 = vmatpush3.bf16.msra.mxu1 %v1871_v15  ;;  %v738_v3 = vmul.f32 %v1988_v8, %v1546_v36 }
 0x12d   :  { %v684_v30 = vpop.xlane.xlu0 %683  ;;  %v1875_v33 = vpack.c.bf16 %v736_v31, %v735_v58  ;;  %1999 = vrsqrt.f32 %v704_v16 }
 0x12e   :  { %v1990_v57 = vpop.eup %1989  ;;  %v703_v39 = vadd.f32 1e-08, %v684_v30  ;;  %v690_v62 = vpop.xlane.xlu1 %689 }
 0x12f   :  { %v706_v52 = vadd.f32 1e-08, %v690_v62  ;;  %1876 = vmatprep.subr.bf16.mxu1 %v1875_v33  ;;  %v737_v11 = vmul.f32 %v1990_v57, %v1545_v37  ;;  %v1992_v0 = vpop.eup %1991 }
 0x130   :  { %2001 = vrsqrt.f32 %v703_v39  ;;  %1878 = vmatpush3.bf16.msra.mxu1 %v1875_v33  ;;  %v740_v58 = vmul.f32 %v1992_v0, %v1548_v40 }
 0x131   :  { %v688_v15 = vpop.xlane.xlu0 %687  ;;  %v1879_v25 = vpack.c.bf16 %v738_v3, %v737_v11  ;;  %2003 = vrsqrt.f32 %v706_v52 }
 0x132   :  { %v1994_v29 = vpop.eup %1993  ;;  %v705_v32 = vadd.f32 1e-08, %v688_v15  ;;  %v1168_v26 = vpop.xlane.xlu1 %1167 }
 0x133   :  { %v1198_v7 = vadd.f32 1e-08, %v1168_v26  ;;  %1880 = vmatprep.subr.bf16.mxu1 %v1879_v25  ;;  %v739_v16 = vmul.f32 %v1994_v29, %v1547_v41  ;;  %v1996_v31 = vpop.eup %1995 }
 0x134   :  { %2005 = vrsqrt.f32 %v705_v32  ;;  %1882 = vmatpush3.bf16.msra.mxu1 %v1879_v25  ;;  %v742_v62 = vmul.f32 %v1996_v31, %v1550_v44 }
 0x135   :  { %v1166_v8 = vpop.xlane.xlu0 %1165  ;;  %v1883_v30 = vpack.c.bf16 %v740_v58, %v739_v16  ;;  %2007 = vrsqrt.f32 %v1198_v7 }
 0x136   :  { %v1998_v33 = vpop.eup %1997  ;;  %v1197_v57 = vadd.f32 1e-08, %v1166_v8  ;;  %v1172_v36 = vpop.xlane.xlu1 %1171 }
 0x137   :  { %v1200_v37 = vadd.f32 1e-08, %v1172_v36  ;;  %1884 = vmatprep.subr.bf16.mxu1 %v1883_v30  ;;  %v741_v39 = vmul.f32 %v1998_v33, %v1549_v45  ;;  %v2000_v52 = vpop.eup %1999 }
 0x138   :  { %2009 = vrsqrt.f32 %v1197_v57  ;;  %1886 = vmatpush3.bf16.msra.mxu1 %v1883_v30  ;;  %v744_v41 = vmul.f32 %v2000_v52, %v1552_v49  ;;  %v724_v52 = vmul.f32 %v2899_v23, %v2228_v27 }
 0x139   :  { %v1170_v11 = vpop.xlane.xlu0 %1169  ;;  %v1887_v3 = vpack.c.bf16 %v742_v62, %v741_v39  ;;  %2011 = vrsqrt.f32 %v1200_v37 }
 0x13a   :  { %v2002_v0 = vpop.eup %2001  ;;  %v1199_v15 = vadd.f32 1e-08, %v1170_v11  ;;  %v1176_v25 = vpop.xlane.xlu1 %1175 }
 0x13b   :  { %v1202_v29 = vadd.f32 1e-08, %v1176_v25  ;;  %1888 = vmatprep.subr.bf16.mxu1 %v1887_v3  ;;  %v743_v40 = vmul.f32 %v2002_v0, %v1551_v50  ;;  %v2004_v32 = vpop.eup %2003 }
 0x13c   :  { %2013 = vrsqrt.f32 %v1199_v15  ;;  %1890 = vmatpush3.bf16.msra.mxu1 %v1887_v3  ;;  %v746_v33 = vmul.f32 %v2004_v32, %v1554_v54  ;;  %v1606_v15 = vsel %vm3396_vm6, 1.0, %v3376_v63 }
 0x13d   :  { %v1174_v26 = vpop.xlane.xlu0 %1173  ;;  %v1891_v7 = vpack.c.bf16 %v744_v41, %v743_v40  ;;  %2015 = vrsqrt.f32 %v1202_v29 }
 0x13e   :  { %v2006_v16 = vpop.eup %2005  ;;  %v1201_v58 = vadd.f32 1e-08, %v1174_v26  ;;  %v1180_v31 = vpop.xlane.xlu1 %1179 }
 0x13f   :  { %v1204_v8 = vadd.f32 1e-08, %v1180_v31  ;;  %1892 = vmatprep.subr.bf16.mxu1 %v1891_v7  ;;  %v745_v30 = vmul.f32 %v2006_v16, %v1553_v55  ;;  %v2008_v44 = vpop.eup %2007 }
 0x140   :  { %2017 = vrsqrt.f32 %v1201_v58  ;;  %1894 = vmatpush3.bf16.msra.mxu1 %v1891_v7  ;;  %v1238_v3 = vmul.f32 %v2008_v44, %v1604_v60  ;;  %v1608_v7 = vsel %vm3398_vm9, 1.0, %v3376_v63  ;;  %v1610_v44 = vsel %vm3399_vm0, 1.0, %v3376_v63 }
 0x141   :  { %v1178_v45 = vpop.xlane.xlu0 %1177  ;;  %v1895_v57 = vpack.c.bf16 %v746_v33, %v745_v30  ;;  %2019 = vrsqrt.f32 %v1204_v8 }
 0x142   :  { %v2010_v36 = vpop.eup %2009  ;;  %v1203_v37 = vadd.f32 1e-08, %v1178_v45  ;;  %v1184_v39 = vpop.xlane.xlu1 %1183 }
 0x143   :  { %v1206_v62 = vadd.f32 1e-08, %v1184_v39  ;;  %1896 = vmatprep.subr.bf16.mxu1 %v1895_v57  ;;  %v1237_v11 = vmul.f32 %v2010_v36, %v1603_v61  ;;  %v2012_v0 = vpop.eup %2011  ;;  %v290_v39 = vand.u32 2147483647, %v2877_v17 }
 0x144   :  { %2021 = vrsqrt.f32 %v1203_v37  ;;  %1898 = vmatpush3.bf16.msra.mxu1 %v1895_v57  ;;  %v1240_v40 = vmul.f32 %v2012_v0, %v1606_v15 }
 0x145   :  { %v1182_v4 = vpop.xlane.xlu0 %1181  ;;  %v1899_v49 = vpack.c.bf16 %v1238_v3, %v1237_v11  ;;  %2023 = vrsqrt.f32 %v1206_v62  ;;  %v1612_v11 = vsel %vm3401_vm12, 1.0, %v3376_v63  ;;  %v291_v15 = vsub.f32 0.0, %v290_v39 }
 0x146   :  { %v2014_v50 = vpop.eup %2013  ;;  %v1205_v23 = vadd.f32 1e-08, %v1182_v4  ;;  %v1188_v27 = vpop.xlane.xlu1 %1187  ;;  %vm150_vm12 = vcmp.lt.s32.totalorder %v2231_v28, 3 }
 0x147   :  { %v1208_v25 = vadd.f32 1e-08, %v1188_v27  ;;  %1788 = vmatmul.mubr.f32.vlgmr.msra.gmra.mrb[0].mxu1 %v724_v52  ;;  %1900 = vmatprep.subr.bf16.mxu1 %v1899_v49  ;;  %v1239_v29 = vmul.f32 %v2014_v50, %v1605_v5  ;;  %v2016_v41 = vpop.eup %2015 }
 0x148   :  { %2025 = vrsqrt.f32 %v1205_v23  ;;  %1902 = vmatpush3.bf16.msra.mxu1 %v1899_v49  ;;  %v1242_v31 = vmul.f32 %v2016_v41, %v1608_v7  ;;  %v292_v7 = vmul.f32 1.442695, %v291_v15 }
 0x149   :  { %v1186_v32 = vpop.xlane.xlu0 %1185  ;;  %v1903_v26 = vpack.c.bf16 %v1240_v40, %v1239_v29  ;;  %2027 = vrsqrt.f32 %v1208_v25  ;;  %v1614_v25 = vsel %vm955_vm8, 1.0, %v3376_v63  ;;  %vm3403_vm8 = vcmp.eq.s32.totalorder %v2231_v28, %v2678_v1  ;;  %v3042_v1 = vld [vmem:[%s3291_s1] sm:$0xff] }
 0x14a   :  { %v2018_v12 = vpop.eup %2017  ;;  %v1207_v16 = vadd.f32 1e-08, %v1186_v32  ;;  %v521_v54 = vpop.xlane.xlu1 %520 }
 0x14b   :  { %v598_v55 = vadd.f32 1e-08, %v521_v54  ;;  %1904 = vmatprep.subr.bf16.mxu1 %v1903_v26  ;;  %v1241_v58 = vmul.f32 %v2018_v12, %v1607_v13  ;;  %v2020_v8 = vpop.eup %2019 }
 0x14c   :  { %2029 = vrsqrt.f32 %v1207_v16  ;;  %1906 = vmatpush3.bf16.msra.mxu1 %v1903_v26  ;;  %v1244_v61 = vmul.f32 %v2020_v8, %v1610_v44 }
 0x14d   :  { %2031 = vrsqrt.f32 %v598_v55  ;;  %v519_v30 = vpop.xlane.xlu0 %518  ;;  %v1907_v33 = vpack.c.bf16 %v1242_v31, %v1241_v58 }
 0x14e   :  { %v2022_v19 = vpop.eup %2021  ;;  %v597_v45 = vadd.f32 1e-08, %v519_v30  ;;  %v1192_v57 = vpop.xlane.xlu1 %1191 }
 0x14f   :  { %v1210_v36 = vadd.f32 1e-08, %v1192_v57  ;;  %1908 = vmatprep.subr.bf16.mxu1 %v1907_v33  ;;  %v1243_v60 = vmul.f32 %v2022_v19, %v1609_v20  ;;  %v2024_v37 = vpop.eup %2023 }
 0x150   :  { %2033 = vrsqrt.f32 %v597_v45  ;;  %1910 = vmatpush3.bf16.msra.mxu1 %v1907_v33  ;;  %v1246_v50 = vmul.f32 %v2024_v37, %v1612_v11 }
 0x151   :  { %v1190_v62 = vpop.xlane.xlu0 %1189  ;;  %v1911_v52 = vpack.c.bf16 %v1244_v61, %v1243_v60  ;;  %2035 = vrsqrt.f32 %v1210_v36 }
 0x152   :  { %v2026_v35 = vpop.eup %2025  ;;  %v1209_v3 = vadd.f32 1e-08, %v1190_v62  ;;  %v525_v0 = vpop.xlane.xlu1 %524 }
 0x153   :  { %v600_v4 = vadd.f32 1e-08, %v525_v0  ;;  %1912 = vmatprep.subr.bf16.mxu1 %v1911_v52  ;;  %v1245_v49 = vmul.f32 %v2026_v35, %v1611_v38  ;;  %v2028_v5 = vpop.eup %2027 }
 0x154   :  { %2037 = vrsqrt.f32 %v1209_v3  ;;  %1914 = vmatpush3.bf16.msra.mxu1 %v1911_v52  ;;  %v1248_v12 = vmul.f32 %v2028_v5, %v1614_v25 }
 0x155   :  { %2039 = vrsqrt.f32 %v600_v4  ;;  %v523_v23 = vpop.xlane.xlu0 %522  ;;  %v1915_v46 = vpack.c.bf16 %v1246_v50, %v1245_v49 }
 0x156   :  { %v2030_v27 = vpop.eup %2029  ;;  %v599_v29 = vadd.f32 1e-08, %v523_v23  ;;  %v1196_v40 = vpop.xlane.xlu1 %1195 }
 0x157   :  { %v2032_v41 = vpop.eup %2031  ;;  %v1212_v32 = vadd.f32 1e-08, %v1196_v40  ;;  %1916 = vmatprep.subr.bf16.mxu1 %v1915_v46  ;;  %v1247_v26 = vmul.f32 %v2030_v27, %v1613_v47 }
 0x158   :  { %v855_v13 = vmul.f32 %v2032_v41, %v521_v54  ;;  %2041 = vrsqrt.f32 %v599_v29  ;;  %1918 = vmatpush3.bf16.msra.mxu1 %v1915_v46  ;;  %v726_v56 = vmul.f32 %v2032_v41, %v2685_v2  ;;  %v1615_v2 = vsel %vm3402_vm2, 1.0, %v3376_v63 }
 0x159   :  { %v1194_v16 = vpop.xlane.xlu0 %1193  ;;  %v1919_v55 = vpack.c.bf16 %v1248_v12, %v1247_v26  ;;  %2043 = vrsqrt.f32 %v1212_v32  ;;  %vm158_vm2 = vcmask 60416  }
 0x15a   :  { %v2034_v53 = vpop.eup %2033  ;;  %v3020_v58 = vmul.f32 %v2032_v41, %v855_v13  ;;  %v1211_v31 = vadd.f32 1e-08, %v1194_v16  ;;  %v529_v8 = vpop.xlane.xlu1 %528 }
 0x15b   :  { %v854_v33 = vmul.f32 %v2034_v53, %v519_v30  ;;  %1920 = vmatprep.subr.bf16.mxu1 %v1919_v55  ;;  %v725_v19 = vmul.f32 %v2034_v53, %v2704_v6  ;;  %v602_v20 = vadd.f32 1e-08, %v529_v8  ;;  %v2036_v44 = vpop.eup %2035  ;;  %v1616_v6 = vsel %vm3403_vm8, 1.0, %v3376_v63 }
 0x15c   :  { %2045 = vrsqrt.f32 %v1211_v31  ;;  %1922 = vmatpush3.bf16.msra.mxu1 %v1919_v55  ;;  %v1250_v39 = vmul.f32 %v2036_v44, %v1616_v6  ;;  %vm176_vm8 = vcmask 125952  }
 0x15d   :  { %v3024_v54 = vmul.f32 %v2034_v53, %v854_v33  ;;  %v3026_v45 = vpop.xlane.xlu0 %526  ;;  %1790 = vmatprep.mubr.f32.mxu1 %v725_v19  ;;  %2047 = vrsqrt.f32 %v602_v20 }
 0x15e   :  { %v2038_v57 = vpop.eup %2037  ;;  %2049 = vpow2.f32 %v292_v7  ;;  %v601_v30 = vadd.f32 1e-08, %v3026_v45  ;;  %1791 = vmatmul.mubr.f32.gmra.mrb[2].mxu1 %v726_v56  ;;  %v1023_v36 = vpop.xlane.xlu1 %1022 }
 0x15f   :  { %v2040_v60 = vpop.eup %2039  ;;  %v1102_v61 = vadd.f32 1e-08, %v1023_v36  ;;  %v1249_v37 = vmul.f32 %v2038_v57, %v1615_v2 }
 0x160   :  { %v857_v62 = vmul.f32 %v2040_v60, %v525_v0  ;;  %2051 = vrsqrt.f32 %v601_v30  ;;  %v728_v3 = vmul.f32 %v2040_v60, %v2733_v14  ;;  %v95_v0 = vmul.f32 %v3042_v1, %v2820_v51  ;;  %v3088_v30 = vld [vmem:[%s3291_s1 + $0x8] sm:$0xff]  ;;  %s2103_s1 = smov 127  }
 0x161   :  { %v3037_v52 = vpop.xlane.xlu0 %1020  ;;  %2053 = vrsqrt.f32 %v1102_v61  ;;  %v1923_v59 = vpack.c.bf16 %v1250_v39, %v1249_v37  ;;  %v2102_v14 = vmov 839922192   ;;  %v96_v61 = vmul.f32 %v3088_v30, %v2825_v24 }
 0x162   :  { %v2042_v35 = vpop.eup %2041  ;;  %v3044_v38 = vmul.f32 %v2040_v60, %v857_v62  ;;  %v1101_v11 = vadd.f32 1e-08, %v3037_v52  ;;  %v3048_v4 = vpop.xlane.xlu1 %1026  ;;  %v49_v47 = vunpack.c.l.s4 %v2102_v14  ;;  %v99_v41 = vcombine.high %v95_v0, %v95_v0 }
 0x163   :  { %v856_v49 = vmul.f32 %v2042_v35, %v523_v23  ;;  %1924 = vmatprep.subr.bf16.mxu1 %v1923_v59  ;;  %v727_v50 = vmul.f32 %v2042_v35, %v2746_v21  ;;  %v1104_v5 = vadd.f32 1e-08, %v3048_v4  ;;  %v2044_v15 = vpop.eup %2043  ;;  %v1617_v23 = vsel %vm3404_vm13, 1.0, %v3376_v63 }
 0x164   :  { %2055 = vrsqrt.f32 %v1101_v11  ;;  %1926 = vmatpush3.bf16.msra.mxu1 %v1923_v59  ;;  %v1618_v21 = vsel %vm3405_vm14, 1.0, %v3376_v63  ;;  %v50_v55 = vunpack.c.0.s8 %v49_v47  ;;  %v103_v53 = vsel %vm37_vm10, %v95_v0, 0.0 }
 0x165   :  { %v3054_v46 = vmul.f32 %v2042_v35, %v856_v49  ;;  %v3056_v27 = vpop.xlane.xlu0 %1024  ;;  %1793 = vmatprep.mubr.f32.mxu1 %v727_v50  ;;  %2057 = vrsqrt.f32 %v1104_v5  ;;  %v1252_v13 = vmul.f32 %v2044_v15, %v1618_v21  ;;  %v104_v44 = vsel %vm37_vm10, %v99_v41, 0.0 }
 0x166   :  { %v2046_v25 = vpop.eup %2045  ;;  %v1103_v29 = vadd.f32 1e-08, %v3056_v27  ;;  %1794 = vmatmul.mubr.f32.gmra.mrb[4].mxu1 %v728_v3  ;;  %v3067_v40 = vpop.xlane.xlu1 %1030  ;;  %v105_v11 = vadd.f32 %v104_v44, %v103_v53  ;;  %v100_v15 = vcombine.high %v96_v61, %v96_v61  ;;  %v106_v14 = vsel %vm37_vm10, %v96_v61, 0.0 }
 0x167   :  { %v2048_v32 = vpop.eup %2047  ;;  %v1106_v26 = vadd.f32 1e-08, %v3067_v40  ;;  %v1251_v12 = vmul.f32 %v2046_v25, %v1617_v23 }
 0x168   :  { %v3070_v7 = vpop.eup %2049  ;;  %v859_v9 = vmul.f32 %v2048_v32, %v529_v8  ;;  %2059 = vrsqrt.f32 %v1103_v29  ;;  %v730_v19 = vmul.f32 %v2048_v32, %v2776_v34  ;;  %v3406_v29 = vld [vmem:[#allocation12_spill] sm:$0xff] }
 0x169   :  { %v3072_v16 = vpop.xlane.xlu0 %1028  ;;  %2061 = vrsqrt.f32 %v1106_v26  ;;  %v1927_v10 = vpack.c.bf16 %v1252_v13, %v1251_v12  ;;  %v294_v60 = vadd.f32 1.0, %v3070_v7 }
 0x16a   :  { %v2052_v31 = vpop.eup %2051  ;;  %v3075_v56 = vmul.f32 %v2048_v32, %v859_v9  ;;  %v1105_v33 = vadd.f32 1e-08, %v3072_v16  ;;  %v3079_v20 = vpop.xlane.xlu1 %1034  ;;  %v107_v32 = vadd.f32 %v106_v14, %v105_v11  ;;  %v108_v9 = vsel %vm37_vm10, %v100_v15, 0.0  ;;  %v3410_v11 = vld [vmem:[#allocation16_spill] sm:$0xff]  ;;  %v3411_v15 = vld [vmem:[#allocation18_spill] sm:$0xff] }
 0x16b   :  { %v2054_v8 = vpop.eup %2053  ;;  %v858_v57 = vmul.f32 %v2052_v31, %v3026_v45  ;;  %1928 = vmatprep.subr.bf16.mxu1 %v1927_v10  ;;  %v729_v2 = vmul.f32 %v2052_v31, %v2787_v42  ;;  %v1108_v6 = vadd.f32 1e-08, %v3079_v20  ;;  %v53_v42 = vsub.s32 %v50_v55, %v2192_v18  ;;  %v3407_v55 = vld [vmem:[#allocation13_spill] sm:$0xff] }
 0x16c   :  { %v1359_v34 = vmul.f32 %v2054_v8, %v1023_v36  ;;  %2063 = vrsqrt.f32 %v1105_v33  ;;  %1930 = vmatpush3.bf16.msra.mxu1 %v1927_v10  ;;  %v1230_v36 = vmul.f32 %v2054_v8, %v2800_v43 }
 0x16d   :  { %v3093_v45 = vmul.f32 %v2052_v31, %v858_v57  ;;  %v3095_v37 = vpop.xlane.xlu0 %1032  ;;  %1796 = vmatprep.mubr.f32.mxu1 %v729_v2  ;;  %2065 = vrsqrt.f32 %v1108_v6  ;;  %v297_v31 = vmul.f32 -0.5, %v3070_v7  ;;  %v109_v2 = vadd.f32 %v108_v9, %v107_v32 }
 0x16e   :  { %v2056_v39 = vpop.eup %2055  ;;  %v3098_v62 = vmul.f32 %v2054_v8, %v1359_v34  ;;  %v1107_v59 = vadd.f32 1e-08, %v3095_v37  ;;  %1797 = vmatmul.mubr.f32.gmra.mrb[6].mxu1 %v730_v19  ;;  %v232_v35 = vpop.permute.xlu1 %231  ;;  %2067 = vlog2.f32 %v294_v60  ;;  %v3408_v8 = vld [vmem:[#allocation14_spill] sm:$0xff] }
 0x16f   :  { %v2058_v3 = vpop.eup %2057  ;;  %v1358_v0 = vmul.f32 %v2056_v39, %v3037_v52  ;;  %v1229_v49 = vmul.f32 %v2056_v39, %v2808_v22  ;;  %v234_v50 = vsel %vm215_vm7, %v232_v35, 0.0  ;;  %v298_v61 = vadd.f32 1.0, %v297_v31 }
 0x170   :  { %v1361_v5 = vmul.f32 %v2058_v3, %v3048_v4  ;;  %2069 = vrsqrt.f32 %v1107_v59  ;;  %235 = vadd.xlane.f32.xlu0 %v234_v50  ;;  %v1232_v52 = vmul.f32 %v2058_v3, %v2815_v48  ;;  %v3409_v59 = vld [vmem:[#allocation15_spill] sm:$0xff] }
 0x171   :  { %v3107_v47 = vmul.f32 %v2056_v39, %v1358_v0  ;;  %1855 = vmatprep.mubr.f32.mxu1 %v1229_v49  ;;  %v3109_v43 = vpop.xlane.xlu0 %45  ;;  %v82_v49 = vcombine.high %v3042_v1, %v3042_v1 }
 0x172   :  { %v2060_v25 = vpop.eup %2059  ;;  %v3111_v23 = vmul.f32 %v2058_v3, %v1361_v5  ;;  %v54_v22 = vrot.slane %v3109_v43, %v53_v42  ;;  %1856 = vmatmul.mubr.f32.vlgmr.msra.gmra.mrb[8].mxu1 %v1230_v36  ;;  %v299_v5 = vmul.f32 %v3070_v7, %v298_v61 }
 0x173   :  { %v2062_v21 = vpop.eup %2061  ;;  %v1360_v4 = vmul.f32 %v2060_v25, %v3056_v27  ;;  %v1231_v41 = vmul.f32 %v2060_v25, %v3406_v29  ;;  %v83_v29 = vcombine.high %v3088_v30, %v3088_v30 }
 0x174   :  { %v1363_v26 = vmul.f32 %v2062_v21, %v3067_v40  ;;  %v56_v12 = vsub.f32 %v2820_v51, %v54_v22  ;;  %v57_v13 = vsub.f32 %v2825_v24, %v54_v22  ;;  %v1234_v53 = vmul.f32 %v2062_v21, %v3407_v55 }
 0x175   :  { %v3121_v10 = vmul.f32 %v2060_v25, %v1360_v4  ;;  %1858 = vmatprep.mubr.f32.mxu1 %v1231_v41  ;;  %v247_v48 = vpop.permute.xlu0 %246  ;;  %v87_v25 = vsel %vm37_vm10, %v82_v49, 0.0 }
 0x176   :  { %v2064_v27 = vpop.eup %2063  ;;  %v3125_v33 = vmul.f32 %v2062_v21, %v1363_v26  ;;  %v58_v19 = vmul.f32 1.442695, %v56_v12  ;;  %v60_v44 = vmul.f32 1.442695, %v57_v13  ;;  %1859 = vmatmul.mubr.f32.gmra.mrb[10].mxu1 %v1232_v52  ;;  %v249_v51 = vsel %vm215_vm7, %v247_v48, 0.0 }
 0x177   :  { %v2066_v40 = vpop.eup %2065  ;;  %v1362_v24 = vmul.f32 %v2064_v27, %v3072_v16  ;;  %v1233_v57 = vmul.f32 %v2064_v27, %v3408_v8  ;;  %250 = vadd.xlane.f32.xlu0 %v249_v51  ;;  %v300_v16 = vand.u32 2147483647, %v3070_v7  ;;  %v89_v13 = vsel %vm37_vm10, %v3088_v30, 0.0 }
 0x178   :  { %v1365_v6 = vmul.f32 %v2066_v40, %v3079_v20  ;;  %2071 = vpow2.f32 %v58_v19  ;;  %v2068_v60 = vpop.eup %2067  ;;  %v1236_v36 = vmul.f32 %v2066_v40, %v3409_v59  ;;  %v288_v20 = vmax.f32 %v2877_v17, 0.0 }
 0x179   :  { %v3131_v34 = vmul.f32 %v2064_v27, %v1362_v24  ;;  %2073 = vpow2.f32 %v60_v44  ;;  %1861 = vmatprep.mubr.f32.mxu1 %v1233_v57  ;;  %v296_v50 = vmul.f32 0.6931472, %v2068_v60  ;;  %vm301_vm4 = vcmp.lt.f32.partialorder %v300_v16, 0.0004427343 }
 0x17a   :  { %v2070_v42 = vpop.eup %2069  ;;  %v3133_v39 = vmul.f32 %v2066_v40, %v1365_v6  ;;  %1862 = vmatmul.mubr.f32.gmra.mrb[12].mxu1 %v1234_v53  ;;  %v289_v14 = vsub.f32 %v288_v20, %v3411_v15  ;;  %v91_v27 = vsel %vm37_vm10, %v83_v29, 0.0  ;;  %v3412_v40 = vld [vmem:[#allocation17_spill] sm:$0xff] }
 0x17b   :  { %v1364_v35 = vmul.f32 %v2070_v42, %v3095_v37  ;;  %v1235_v3 = vmul.f32 %v2070_v42, %v3410_v11  ;;  %110 = vadd.xlane.f32.xlu0 %v109_v2  ;;  %v86_v37 = vsel %vm37_vm10, %v3042_v1, 0.0  ;;  %v302_v22 = vsel %vm301_vm4, %v299_v5, %v296_v50 }
 0x17c   :  { %v88_v41 = vadd.f32 %v87_v25, %v86_v37  ;;  %v303_v32 = vadd.f32 %v302_v22, %v289_v14  ;;  %v3160_v24 = vsub.f32 %v2877_v17, %v3412_v40 }
 0x17d   :  { %v3140_v0 = vmul.f32 %v2070_v42, %v1364_v35  ;;  %1864 = vmatprep.mubr.f32.mxu1 %v1235_v3  ;;  %v1749_v35 = vpop.f32.mrb[0].mxu0 }
 0x17e   :  { %1865 = vmatmul.mubr.f32.gmra.mrb[14].mxu1 %v1236_v36  ;;  %v90_v53 = vadd.f32 %v89_v13, %v88_v41  ;;  %v304_v48 = vsub.f32 0.0, %v303_v32  ;;  %v129_v30 = vand.u32 2147483647, %v3160_v24  ;;  %v131_v8 = vmul.f32 0.5, %v3160_v24  ;;  %v564_v11 = vpop.f32.mrb[1].mxu0 }
 0x17f   :  { %v210_v59 = vmul.f32 %v3160_v24, %v3160_v24  ;;  %v1750_v3 = vpop.f32.mrb[2].mxu0 }
 0x180   :  { %v92_v44 = vadd.f32 %v91_v27, %v90_v53  ;;  %v305_v51 = vmul.f32 1.442695, %v304_v48  ;;  %v132_v57 = vmul.f32 %v131_v8, %v3160_v24  ;;  %v1522_v2 = vadd.f32 -0.5, %v129_v30  ;;  %v567_v20 = vpop.f32.mrb[3].mxu0 }
 0x181   :  { %vm130_vm11 = vcmp.le.f32.partialorder %v129_v30, 1.0 }
 0x182   :  { %v2072_v52 = vpop.eup %2071  ;;  %2075 = vpow2.f32 %v305_v51  ;;  %v134_v60 = vsel %vm130_vm11, %v132_v57, %v1522_v2 }
 0x183   :  { %v2074_v21 = vpop.eup %2073  ;;  %v64_v4 = vcombine.high %v2072_v52, %v2072_v52  ;;  %v68_v7 = vsel %vm37_vm10, %v2072_v52, 0.0  ;;  %v1753_v49 = vpop.f32.mrb[4].mxu0 }
 0x184   :  { %v65_v26 = vcombine.high %v2074_v21, %v2074_v21  ;;  %v71_v9 = vsel %vm37_vm10, %v2074_v21, 0.0  ;;  %v580_v50 = vpop.f32.mrb[5].mxu0 }
 0x185   :  { %v69_v12 = vsel %vm37_vm10, %v64_v4, 0.0  ;;  %v1754_v5 = vpop.f32.mrb[6].mxu0 }
 0x186   :  { %v70_v1 = vadd.f32 %v69_v12, %v68_v7  ;;  %v73_v31 = vsel %vm37_vm10, %v65_v26, 0.0  ;;  %vm114_vm10 = vcmask 3072   ;;  %v583_v15 = vpop.f32.mrb[7].mxu0 }
 0x187   :  { %v135_v42 = vsel %vm114_vm10, %v134_v60, 0.0 }
 0x188   :  { %v72_v55 = vadd.f32 %v71_v9, %v70_v1  ;;  %136 = vadd.xlane.f32.xlu0 %v135_v42 }
 0x18a   :  { %v74_v19 = vadd.f32 %v73_v31, %v72_v55 }
 0x18c   :  { %75 = vadd.xlane.f32.xlu1 %v74_v19  ;;  %v2076_v6 = vpop.eup %2075 }
 0x18d   :  { %v307_v61 = vsub.f32 1.0, %v2076_v6 }
 0x18f   :  { %v308_v17 = vmul.f32 %v307_v61, %v307_v61 }
 0x190   :  { %93 = vadd.xlane.f32.xlu1 %v92_v44 }
 0x191   :  { %v309_v36 = vmul.f32 0.25, %v308_v17 }
 0x193   :  { %v310_v16 = vmul.f32 %v309_v36, %v303_v32 }
 0x19b   :  { %v1817_v14 = vpop.f32.mrb[8].mxu0 }
 0x19c   :  { %v1392_v37 = vsub.f32 %v1749_v35, %v1817_v14  ;;  %v1070_v25 = vpop.f32.mrb[9].mxu0 }
 0x19d   :  { %v1390_v22 = vsub.f32 %v564_v11, %v1070_v25  ;;  %v1818_v52 = vpop.f32.mrb[10].mxu0  ;;  %v264_v25 = vpop.permute.xlu1 %263 }
 0x19e   :  { %v1393_v21 = vsub.f32 %v1750_v3, %v1818_v52  ;;  %v1073_v4 = vpop.f32.mrb[11].mxu0  ;;  %v1408_v29 = vmul.f32 %v1392_v37, %v1392_v37  ;;  %v3186_v52 = vsel %vm354_vm3, 1.0, %v3376_v63 }
 0x19f   :  { %v1406_v41 = vmul.f32 %v1390_v22, %v1390_v22  ;;  %v1391_v32 = vsub.f32 %v567_v20, %v1073_v4  ;;  %v3414_v4 = vld [vmem:[#allocation20_spill] sm:$0xff] }
 0x1a0   :  { %v1409_v1 = vmul.f32 %v1393_v21, %v1393_v21  ;;  %v1418_v27 = vsel %vm1414_vm1, %v1408_v29, 0.0 }
 0x1a1   :  { %153 = vrot.lane.b32.xlu1 %v3160_v24, %s2103_s1  ;;  %v1415_v13 = vsel %vm1414_vm1, %v1406_v41, 0.0  ;;  %v1407_v9 = vmul.f32 %v1391_v32, %v1391_v32  ;;  %v3415_v32 = vld [vmem:[#allocation19_spill] sm:$0xff] }
 0x1a2   :  { %v1420_v30 = vsel %vm1414_vm1, %v1409_v1, 0.0  ;;  %v3196_v18 = vmul.f32 %v3186_v52, %v3415_v32 }
 0x1a3   :  { %v1821_v26 = vpop.f32.mrb[12].mxu0  ;;  %v1416_v19 = vsel %vm1414_vm1, %v1407_v9, 0.0  ;;  %v2106_v9 = vmov 1.0  }
 0x1a4   :  { %v1396_v7 = vsub.f32 %v1753_v49, %v1821_v26  ;;  %v1086_v12 = vpop.f32.mrb[13].mxu0  ;;  %v1417_v40 = vadd.f32 %v1416_v19, %v1415_v13 }
 0x1a5   :  { %173 = vrot.lane.b32.xlu1 %v134_v60, %s2104_s15  ;;  %v1394_v55 = vsub.f32 %v580_v50, %v1086_v12  ;;  %v1822_v53 = vpop.f32.mrb[14].mxu0 }
 0x1a6   :  { %v1397_v48 = vsub.f32 %v1754_v5, %v1822_v53  ;;  %v1089_v31 = vpop.f32.mrb[15].mxu0  ;;  %v1419_v57 = vadd.f32 %v1418_v27, %v1417_v40  ;;  %v1412_v53 = vmul.f32 %v1396_v7, %v1396_v7 }
 0x1a7   :  { %v1410_v44 = vmul.f32 %v1394_v55, %v1394_v55  ;;  %v1395_v51 = vsub.f32 %v583_v15, %v1089_v31  ;;  %v3413_v15 = vld [vmem:[#allocation5_spill] sm:$0xff]  ;;  %v151_v55 = vsel %vm150_vm12, 2.0, %v2106_v9 }
 0x1a8   :  { %v1421_v6 = vadd.f32 %v1420_v30, %v1419_v57  ;;  %vm355_vm0 = vcmp.eq.s32.totalorder %v3413_v15, %v2231_v28  ;;  %v1413_v19 = vmul.f32 %v1397_v48, %v1397_v48  ;;  %v1426_v40 = vsel %vm1414_vm1, %v1412_v53, 0.0  ;;  %v3418_v15 = vld [vmem:[#allocation8_spill] sm:$0xff]  ;;  %v3420_v53 = vld [vmem:[#allocation11_spill] sm:$0xff] }
 0x1a9   :  { %212 = vrot.lane.b32.xlu1 %v210_v59, %s2101_s12  ;;  %v1411_v8 = vmul.f32 %v1395_v51, %v1395_v51  ;;  %v1422_v2 = vsel %vm1414_vm1, %v1410_v44, 0.0  ;;  %v3183_v22 = vsel %vm355_vm0, 1.0, %v3376_v63  ;;  %vm359_vm4 = vcmp.eq.s32.totalorder %v3418_v15, %v2231_v28 }
 0x1aa   :  { %v1423_v61 = vadd.f32 %v1422_v2, %v1421_v6  ;;  %v3190_v29 = vmul.f32 %v3183_v22, %v3414_v4  ;;  %v1428_v6 = vsel %vm1414_vm1, %v1413_v19, 0.0 }
 0x1ab   :  { %v1424_v60 = vsel %vm1414_vm1, %v1411_v8, 0.0 }
 0x1ac   :  { %v1425_v42 = vadd.f32 %v1424_v60, %v1423_v61 }
 0x1ad   :  { %312 = vrot.lane.b32.xlu1 %v310_v16, %s2105_s16 }
 0x1ae   :  { %v1427_v7 = vadd.f32 %v1426_v40, %v1425_v42 }
 0x1fd   :  { %v236_v17 = vpop.xlane.xlu0 %235 }
 0x1fe   :  { %2077 = vrsqrt.f32 %v236_v17  ;;  %vm239_vm5 = vcmp.eq.f32.partialorder %v236_v17, inf  ;;  %v242_v35 = vand.u32 2147483648, %v236_v17  ;;  %vm241_vm6 = vcmp.eq.f32.partialorder %v236_v17, 0.0 }
 0x204   :  { %v251_v59 = vpop.xlane.xlu0 %250 }
 0x205   :  { %2079 = vrsqrt.f32 %v251_v59  ;;  %vm254_vm15 = vcmp.eq.f32.partialorder %v251_v59, inf  ;;  %v257_v20 = vand.u32 2147483648, %v251_v59  ;;  %vm256_vm9 = vcmp.eq.f32.partialorder %v251_v59, 0.0 }
 0x208   :  { %v2078_v36 = vpop.eup %2077  ;;  %v111_v48 = vpop.xlane.xlu0 %110 }
 0x209   :  { %v238_v16 = vmul.f32 %v2078_v36, %v236_v17  ;;  %v3416_v36 = vld [vmem:[#allocation7_spill] sm:$0xff] }
 0x20a   :  { %vm357_vm13 = vcmp.eq.s32.totalorder %v3416_v36, %v2231_v28 }
 0x20b   :  { %v240_v11 = vsel %vm239_vm5, %v236_v17, %v238_v16  ;;  %v3211_v17 = vadd.f32 %v1428_v6, %v1427_v7  ;;  %vm361_vm5 = vcmp.eq.s32.totalorder %v3420_v53, %v2231_v28  ;;  %v1374_v6 = vmul.f32 %v3186_v52, %v3107_v47 }
 0x20c   :  { %v243_v50 = vsel %vm241_vm6, %v242_v35, %v240_v11  ;;  %v3417_v35 = vld [vmem:[#allocation6_spill] sm:$0xff]  ;;  %v1530_v19 = vsel %vm361_vm5, 1.0, %v3376_v63 }
 0x20d   :  { %vm356_vm14 = vcmp.eq.s32.totalorder %v3417_v35, %v2231_v28 }
 0x20e   :  { %v1525_v42 = vsel %vm356_vm14, 1.0, %v3376_v63 }
 0x20f   :  { %v2080_v3 = vpop.eup %2079 }
 0x210   :  { %v253_v49 = vmul.f32 %v2080_v3, %v251_v59 }
 0x212   :  { %v255_v5 = vsel %vm254_vm15, %v251_v59, %v253_v49  ;;  %v266_v59 = vsel %vm215_vm7, %v264_v25, 0.0  ;;  %v870_v49 = vmul.f32 %v1525_v42, %v3024_v54  ;;  %v3419_v25 = vld [vmem:[#allocation9_spill] sm:$0xff]  ;;  %vm190_vm15 = vcmp.ge.s32.totalorder %v2231_v28, 6 }
 0x213   :  { %v258_v14 = vsel %vm256_vm9, %v257_v20, %v255_v5  ;;  %vm358_vm11 = vcmp.eq.s32.totalorder %v3419_v25, %v2231_v28 }
 0x214   :  { %v3180_v37 = vmul.f32 %v258_v14, %v243_v50  ;;  %v1527_v4 = vsel %vm358_vm11, 1.0, %v3376_v63 }
 0x219   :  { %v76_v21 = vpop.xlane.xlu1 %75 }
 0x21a   :  { %2081 = vlog2.f32 %v76_v21  ;;  %v3192_v41 = vpop.f32.mrb[0].mxu1  ;;  %v1528_v21 = vsel %vm359_vm4, 1.0, %v3376_v63 }
 0x21b   :  { %v877_v26 = vsub.f32 %v3190_v29, %v3192_v41  ;;  %v3200_v12 = vpop.f32.mrb[1].mxu1  ;;  %v873_v32 = vmul.f32 %v1528_v21, %v3044_v38  ;;  %v1379_v29 = vmul.f32 %v1528_v21, %v3125_v33 }
 0x21c   :  { %v876_v13 = vsub.f32 %v3196_v18, %v3200_v12  ;;  %v1378_v18 = vmul.f32 %v1527_v4, %v3131_v34 }
 0x21d   :  { %v94_v1 = vpop.xlane.xlu1 %93 }
 0x221   :  { %v154_v31 = vpop.permute.xlu1 %153 }
 0x222   :  { %v156_v27 = vmul.f32 %v154_v31, %v151_v55 }
 0x224   :  { %v2082_v44 = vpop.eup %2081  ;;  %v157_v51 = vmul.f32 %v156_v27, %v156_v27  ;;  %v3421_v27 = vld [vmem:[#allocation10_spill] sm:$0xff] }
 0x225   :  { %v78_v30 = vmul.f32 0.6931472, %v2082_v44  ;;  %v174_v8 = vpop.permute.xlu1 %173  ;;  %vm360_vm6 = vcmp.eq.s32.totalorder %v3421_v27, %v2231_v28 }
 0x226   :  { %v159_v57 = vsel %vm158_vm2, %v157_v51, 0.0  ;;  %v177_v2 = vsel %vm176_vm8, %v174_v8, 0.0  ;;  %v1529_v44 = vsel %vm360_vm6, 1.0, %v3376_v63  ;;  %v875_v51 = vmul.f32 %v1530_v19, %v3075_v56 }
 0x227   :  { %v79_v60 = vadd.f32 %v78_v30, %v3109_v43  ;;  %160 = vadd.xlane.f32.xlu0 %v159_v57  ;;  %178 = vadd.xlane.f32.xlu1 %v177_v2  ;;  %v1526_v43 = vsel %vm357_vm13, 1.0, %v3376_v63  ;;  %v874_v38 = vmul.f32 %v1529_v44, %v3093_v45  ;;  %v1375_v57 = vmul.f32 %v3183_v22, %v3098_v62 }
 0x228   :  { %v871_v3 = vmul.f32 %v1526_v43, %v3020_v58  ;;  %v872_v58 = vmul.f32 %v1527_v4, %v3054_v46  ;;  %v1377_v45 = vmul.f32 %v1526_v43, %v3111_v23  ;;  %v1376_v62 = vmul.f32 %v1525_v42, %v3121_v10 }
 0x229   :  { %v112_v61 = vmul.f32 %v94_v1, %v79_v60  ;;  %v1380_v33 = vmul.f32 %v1529_v44, %v3140_v0 }
 0x22b   :  { %v113_v16 = vsub.f32 %v112_v61, %v111_v48  ;;  %267 = vadd.xlane.f32.xlu0 %v266_v59 }
 0x22d   :  { %v115_v11 = vsel %vm114_vm10, %v113_v16, 0.0 }
 0x22e   :  { %116 = vadd.xlane.f32.xlu1 %v115_v11 }
 0x231   :  { %v1792_v20 = vpop.f32.mrb[2].mxu1 }
 0x232   :  { %v879_v50 = vsub.f32 %v871_v3, %v1792_v20  ;;  %v823_v5 = vpop.f32.mrb[3].mxu1  ;;  %v1381_v3 = vmul.f32 %v1530_v19, %v3133_v39 }
 0x233   :  { %v878_v14 = vsub.f32 %v870_v49, %v823_v5 }
 0x239   :  { %v1795_v1 = vpop.f32.mrb[4].mxu1 }
 0x23a   :  { %v881_v55 = vsub.f32 %v873_v32, %v1795_v1  ;;  %v833_v54 = vpop.f32.mrb[5].mxu1 }
 0x23b   :  { %v880_v31 = vsub.f32 %v872_v58, %v833_v54 }
 0x241   :  { %v1798_v40 = vpop.f32.mrb[6].mxu1  ;;  %192 = vrot.lane.b32.xlu0 %v3160_v24, %s2107_s17 }
 0x242   :  { %v883_v46 = vsub.f32 %v875_v51, %v1798_v40  ;;  %v843_v30 = vpop.f32.mrb[7].mxu1  ;;  %v213_v40 = vpop.permute.xlu1 %212 }
 0x243   :  { %v882_v8 = vsub.f32 %v874_v38, %v843_v30  ;;  %v260_v38 = vmax.f32 %v3180_v37, 1e-08 }
 0x245   :  { %v1857_v2 = vpop.f32.mrb[8].mxu1  ;;  %2083 = vrcp.f32 %v260_v38 }
 0x246   :  { %v1383_v60 = vsub.f32 %v1375_v57, %v1857_v2  ;;  %v1319_v63 = vpop.f32.mrb[9].mxu1  ;;  %v313_v30 = vpop.permute.xlu1 %312 }
 0x247   :  { %v1382_v7 = vsub.f32 %v1374_v6, %v1319_v63 }
 0x248   :  { %v1399_v56 = vsub.f32 %v877_v26, %v1383_v60 }
 0x249   :  { %v1398_v24 = vsub.f32 %v876_v13, %v1382_v7  ;;  %v1860_v48 = vpop.f32.mrb[10].mxu1 }
 0x24a   :  { %v1444_v22 = vmul.f32 %v1399_v56, %v1399_v56  ;;  %v1385_v61 = vsub.f32 %v1377_v45, %v1860_v48  ;;  %v1329_v59 = vpop.f32.mrb[11].mxu1 }
 0x24b   :  { %v1443_v47 = vmul.f32 %v1398_v24, %v1398_v24  ;;  %v1384_v52 = vsub.f32 %v1376_v62, %v1329_v59  ;;  %v191_v62 = vsel %vm190_vm15, 2.0, %v2106_v9 }
 0x24c   :  { %v1452_v36 = vsel %vm1414_vm1, %v1444_v22, 0.0  ;;  %v1401_v16 = vsub.f32 %v879_v50, %v1385_v61 }
 0x24d   :  { %v1451_v41 = vsel %vm1414_vm1, %v1443_v47, 0.0  ;;  %v1400_v23 = vsub.f32 %v878_v14, %v1384_v52  ;;  %v1863_v26 = vpop.f32.mrb[12].mxu1 }
 0x24e   :  { %v1453_v12 = vadd.f32 %v1452_v36, %v1451_v41  ;;  %v1387_v13 = vsub.f32 %v1379_v29, %v1863_v26  ;;  %v1339_v35 = vpop.f32.mrb[13].mxu1  ;;  %v1446_v10 = vmul.f32 %v1401_v16, %v1401_v16 }
 0x24f   :  { %v1445_v11 = vmul.f32 %v1400_v23, %v1400_v23  ;;  %v1386_v43 = vsub.f32 %v1378_v18, %v1339_v35  ;;  %v2084_v56 = vpop.eup %2083 }
 0x250   :  { %v1403_v42 = vsub.f32 %v881_v55, %v1387_v13  ;;  %v1456_v34 = vsel %vm1414_vm1, %v1446_v10, 0.0  ;;  %v216_v13 = vsel %vm215_vm7, %v213_v40, 0.0 }
 0x251   :  { %v1454_v20 = vsel %vm1414_vm1, %v1445_v11, 0.0  ;;  %v1402_v49 = vsub.f32 %v880_v31, %v1386_v43  ;;  %v1866_v50 = vpop.f32.mrb[14].mxu1 }
 0x252   :  { %v1455_v5 = vadd.f32 %v1454_v20, %v1453_v12  ;;  %v1389_v15 = vsub.f32 %v1381_v3, %v1866_v50  ;;  %v1349_v14 = vpop.f32.mrb[15].mxu1  ;;  %v1448_v25 = vmul.f32 %v1403_v42, %v1403_v42  ;;  %v315_v3 = vsel %vm176_vm8, %v313_v30, 0.0 }
 0x253   :  { %v1447_v21 = vmul.f32 %v1402_v49, %v1402_v49  ;;  %v1388_v4 = vsub.f32 %v1380_v33, %v1349_v14 }
 0x254   :  { %v1457_v32 = vadd.f32 %v1456_v34, %v1455_v5  ;;  %v1405_v1 = vsub.f32 %v883_v46, %v1389_v15  ;;  %v1460_v54 = vsel %vm1414_vm1, %v1448_v25, 0.0  ;;  %v137_v46 = vpop.xlane.xlu0 %136 }
 0x255   :  { %v1458_v58 = vsel %vm1414_vm1, %v1447_v21, 0.0  ;;  %v1404_v55 = vsub.f32 %v882_v8, %v1388_v4  ;;  %v138_v57 = vrot.slane %v137_v46, 4 }
 0x256   :  { %v1459_v39 = vadd.f32 %v1458_v58, %v1457_v32  ;;  %v1450_v53 = vmul.f32 %v1405_v1, %v1405_v1 }
 0x257   :  { %v1449_v31 = vmul.f32 %v1404_v55, %v1404_v55  ;;  %v139_v63 = vadd.f32 %v138_v57, %v137_v46 }
 0x258   :  { %v1461_v27 = vadd.f32 %v1460_v54, %v1459_v39  ;;  %v1464_v44 = vsel %vm1414_vm1, %v1450_v53, 0.0 }
 0x259   :  { %v1462_v0 = vsel %vm1414_vm1, %v1449_v31, 0.0  ;;  %v140_v22 = vrot.slane %v139_v63, 2 }
 0x25a   :  { %v1463_v19 = vadd.f32 %v1462_v0, %v1461_v27 }
 0x25b   :  { %v141_v23 = vadd.f32 %v140_v22, %v139_v63 }
 0x25c   :  { %v1465_v51 = vadd.f32 %v1464_v44, %v1463_v19 }
 0x25d   :  { %v142_v35 = vrot.slane %v141_v23, 1 }
 0x25f   :  { %v143_v20 = vadd.f32 %v142_v35, %v141_v23 }
 0x2b4   :  { %v161_v8 = vpop.xlane.xlu0 %160  ;;  %v179_v2 = vpop.xlane.xlu1 %178 }
 0x2b5   :  { %v162_v6 = vrot.slane %v161_v8, 4  ;;  %v180_v60 = vrot.slane %v179_v2, 4 }
 0x2b7   :  { %v181_v7 = vadd.f32 %v180_v60, %v179_v2  ;;  %v163_v45 = vadd.f32 %v162_v6, %v161_v8 }
 0x2b8   :  { %v268_v24 = vpop.xlane.xlu0 %267 }
 0x2b9   :  { %v270_v48 = vmul.f32 %v2084_v56, %v268_v24  ;;  %v182_v37 = vrot.slane %v181_v7, 2  ;;  %v164_v47 = vrot.slane %v163_v45, 2 }
 0x2bb   :  { %v117_v61 = vpop.xlane.xlu1 %116  ;;  %v272_v59 = vsel %vm114_vm10, %v270_v48, 0.0  ;;  %v183_v28 = vadd.f32 %v182_v37, %v181_v7  ;;  %v165_v18 = vadd.f32 %v164_v47, %v163_v45 }
 0x2bc   :  { %v118_v52 = vrot.slane %v117_v61, 4  ;;  %273 = vadd.xlane.f32.xlu1 %v272_v59  ;;  %v193_v36 = vpop.permute.xlu0 %192 }
 0x2bd   :  { %v195_v16 = vmul.f32 %v193_v36, %v191_v62  ;;  %v184_v10 = vrot.slane %v183_v28, 1  ;;  %v166_v43 = vrot.slane %v165_v18, 1 }
 0x2be   :  { %v119_v29 = vadd.f32 %v118_v52, %v117_v61 }
 0x2bf   :  { %v196_v41 = vmul.f32 %v195_v16, %v195_v16  ;;  %v185_v49 = vadd.f32 %v184_v10, %v183_v28  ;;  %v167_v50 = vadd.f32 %v166_v43, %v165_v18 }
 0x2c0   :  { %v120_v26 = vrot.slane %v119_v29, 2  ;;  %1430 = vadd.xlane.f32.xlu1 %v3211_v17 }
 0x2c1   :  { %v197_v9 = vsel %vm158_vm2, %v196_v41, 0.0 }
 0x2c2   :  { %198 = vadd.xlane.f32.xlu0 %v197_v9  ;;  %v121_v12 = vadd.f32 %v120_v26, %v119_v29 }
 0x2c4   :  { %v122_v11 = vrot.slane %v121_v12, 1 }
 0x2c6   :  { %217 = vadd.xlane.f32.xlu0 %v216_v13  ;;  %v123_v42 = vadd.f32 %v122_v11, %v121_v12 }
 0x2c8   :  { %1931 = vpush %v123_v42 }
 0x2c9   :  { %1933 = vpush %v143_v20 }
 0x2ca   :  { %1935 = vpush %v167_v50  ;;  %316 = vadd.xlane.f32.xlu0 %v315_v3 }
 0x2cb   :  { %1937 = vpush %v185_v49 }
 0x2ce   :  { %1466 = vadd.xlane.f32.xlu0 %v1465_v51 }
 0x2f9   :  { %s1932_s18 = spop %1931 }
 0x2fa   :  { %s127_s19 = smul.f32 0.25, %s1932_s18  ;;  %s1934_s20 = spop %1933 }
 0x2fb   :  { %s147_s21 = smul.f32 0.25, %s1934_s20  ;;  %s1936_s22 = spop %1935 }
 0x2fc   :  { %1492 = sst [smem:[#allocation2]] %s127_s19  ;;  %s171_s23 = smul.f32 0.03125, %s1936_s22 }
 0x2fd   :  { %s3272_s24 = sadd.f32 %s147_s21, %s127_s19  ;;  %s1938_s25 = spop %1937 }
 0x2fe   :  { %1494 = sst [smem:[#allocation2 + $0x1]] %s147_s21  ;;  %s1480_s26 = smul.f32 1.5, %s171_s23 }
 0x2ff   :  { %1496 = sst [smem:[#allocation2 + $0x2]] %s171_s23  ;;  %s189_s27 = smul.f32 0.015625, %s1938_s25 }
 0x301   :  { %s3274_s28 = sadd.f32 %s1480_s26, %s189_s27 }
 0x302   :  { %1498 = sst [smem:[#allocation2 + $0x3]] %s189_s27 }
 0x349   :  { %v274_v17 = vpop.xlane.xlu1 %273 }
 0x34a   :  { %v275_v33 = vrot.slane %v274_v17, 4 }
 0x34c   :  { %v276_v15 = vadd.f32 %v275_v33, %v274_v17 }
 0x34d   :  { %v1431_v5 = vpop.xlane.xlu1 %1430 }
 0x34e   :  { %v1432_v14 = vrot.slane %v1431_v5, 4  ;;  %v277_v4 = vrot.slane %v276_v15, 2 }
 0x34f   :  { %v199_v34 = vpop.xlane.xlu0 %198 }
 0x350   :  { %v200_v25 = vrot.slane %v199_v34, 4  ;;  %v1433_v32 = vadd.f32 %v1432_v14, %v1431_v5  ;;  %v278_v27 = vadd.f32 %v277_v4, %v276_v15 }
 0x352   :  { %v201_v21 = vadd.f32 %v200_v25, %v199_v34  ;;  %v1434_v53 = vrot.slane %v1433_v32, 2  ;;  %v279_v57 = vrot.slane %v278_v27, 1 }
 0x353   :  { %v218_v1 = vpop.xlane.xlu0 %217 }
 0x354   :  { %v202_v58 = vrot.slane %v201_v21, 2  ;;  %v219_v55 = vrot.slane %v218_v1, 4  ;;  %v1435_v30 = vadd.f32 %v1434_v53, %v1433_v32  ;;  %v280_v56 = vadd.f32 %v279_v57, %v278_v27 }
 0x356   :  { %v220_v39 = vadd.f32 %v219_v55, %v218_v1  ;;  %v203_v54 = vadd.f32 %v202_v58, %v201_v21  ;;  %v1436_v45 = vrot.slane %v1435_v30, 1 }
 0x357   :  { %v317_v31 = vpop.xlane.xlu0 %316 }
 0x358   :  { %v221_v0 = vrot.slane %v220_v39, 2  ;;  %v318_v19 = vrot.slane %v317_v31, 4  ;;  %v204_v44 = vrot.slane %v203_v54, 1  ;;  %v1437_v37 = vadd.f32 %v1436_v45, %v1435_v30 }
 0x35a   :  { %v319_v51 = vadd.f32 %v318_v19, %v317_v31  ;;  %v205_v40 = vadd.f32 %v204_v44, %v203_v54  ;;  %v222_v38 = vadd.f32 %v221_v0, %v220_v39 }
 0x35b   :  { %v1467_v46 = vpop.xlane.xlu0 %1466 }
 0x35c   :  { %v320_v8 = vrot.slane %v319_v51, 2  ;;  %v1468_v2 = vrot.slane %v1467_v46, 4  ;;  %1939 = vpush %v205_v40  ;;  %v223_v6 = vrot.slane %v222_v38, 1 }
 0x35e   :  { %v1469_v60 = vadd.f32 %v1468_v2, %v1467_v46  ;;  %v224_v63 = vadd.f32 %v223_v6, %v222_v38  ;;  %v321_v7 = vadd.f32 %v320_v8, %v319_v51 }
 0x360   :  { %v1470_v24 = vrot.slane %v1469_v60, 2  ;;  %1941 = vpush %v224_v63  ;;  %v322_v48 = vrot.slane %v321_v7, 1 }
 0x361   :  { %1943 = vpush %v280_v56 }
 0x362   :  { %v1471_v62 = vadd.f32 %v1470_v24, %v1469_v60  ;;  %v323_v22 = vadd.f32 %v322_v48, %v321_v7 }
 0x364   :  { %1945 = vpush %v323_v22  ;;  %v1472_v61 = vrot.slane %v1471_v62, 1 }
 0x365   :  { %1947 = vpush %v1437_v37 }
 0x366   :  { %v1473_v59 = vadd.f32 %v1472_v61, %v1471_v62 }
 0x368   :  { %1949 = vpush %v1473_v59 }
 0x38d   :  { %s1940_s29 = spop %1939 }
 0x38e   :  { %s209_s30 = smul.f32 0.03125, %s1940_s29 }
 0x390   :  { %1500 = sst [smem:[#allocation2 + $0x4]] %s209_s30  ;;  %s1482_s5 = smul.f32 5.0, %s209_s30 }
 0x391   :  { %s1942_s4 = spop %1941  ;;  %s2085_s30 = scalar_lea.hbm %s3296_s6, 16 }
 0x392   :  { %s1944_s7 = spop %1943  ;;  %s228_s8 = smul.f32 0.0078125, %s1942_s4 }
 0x393   :  { %s284_s0 = smul.f32 0.25, %s1944_s7  ;;  %s1483_s14 = sadd.f32 %s1482_s5, %s3274_s28 }
 0x394   :  { %s271_s2 = smul.f32 0.7, %s228_s8  ;;  %p2086_p0 = scmp.ne.s32.totalorder %s3296_s6, %s2085_s30 }
 0x395   :  { %s1946_s9 = spop %1945  ;;  %s285_s11 = ssub.f32 1.0, %s284_s0 }
 0x396   :  { %s327_s10 = smul.f32 0.015625, %s1946_s9  ;;  %s1948_s12 = spop %1947 }
 0x397   :  { %s286_s3 = smul.f32 0.3, %s285_s11  ;;  %p2089_p1 = scmp.lt.u32.totalorder %s2085_s30, %s3296_s6 }
 0x398   :  { %1504 = sst [smem:[#allocation2 + $0x6]] %s327_s10  ;;  %s1439_s1 = smul.f32 0.7, %s1948_s12 }
 0x399   :  { %s1950_s13 = spop %1949  ;;  %s287_s15 = sadd.f32 %s286_s3, %s271_s2 }
 0x39a   :  { %s1475_s16 = smul.f32 0.3, %s1950_s13  ;;  %p2091_p2 = pnand %p2089_p1, %p2086_p0 }
 0x39b   :  { %s1485_s17 = smul.f32 1.5, %s327_s10  ;;  %s1484_s18 = sadd.f32 %s1483_s14, %s287_s15 }
 0x39c   :  { %s1478_s19 = smul.f32 0.00024414063, %s1475_s16  ;;  %1502 = sst [smem:[#allocation2 + $0x5]] %s287_s15 }
 0x39d   :  { %s1442_s20 = smul.f32 0.00024414063, %s1439_s1  ;;  %s1486_s21 = sadd.f32 %s1485_s17, %s1484_s18 }
 0x39f   :  { %s1479_s22 = sadd.f32 %s1478_s19, %s1442_s20  ;;  %s1488_s23 = smul.f32 2.0, %s1486_s21 }
 0x3a1   :  { %1506 = sst [smem:[#allocation2 + $0x7]] %s1479_s22 }
 0x3a2   :  { %s1489_s25 = sadd.f32 %s1488_s23, %s3272_s24 }
 0x3a4   :  { %s1490_s26 = sadd.f32 %s1489_s25, %s1479_s22 }
 0x3a6   :  { %1508 = sst [smem:[#allocation2 + $0x8]] %s1490_s26 }
 0x3a7   :  { %2094 = shalt.err (!%p2091_p2)
}
 0x3a8   :  { %s2108_s8 = smov [#allocation2]  }
 0x3a9   :  { %1516 = dma.smem_to_hbm %s2108_s8, 16, %s3296_s6, [#allocation3]  }
 0x3aa   :  { %2095 = dma.done.wait [#allocation3], 16  }
 0x3ab   :  { %2096 = vsyncadd [#allocation3], 4294967280 }
 0x3ac   :  { %1520 = sfence }
 0x3ad   :  { %1521 = vsyncpa [#allocation3], 1 }

</bundles_post_ra>
